<compile_context>
chip_gen: v6e
topology: v6e:2x2x1
jax: 0.10.0
libtpu: 0.0.40
codegen_flags: <defaults>
</compile_context>

<pallas_src>
import functools

import jax
import jax.numpy as jnp
from jax import lax
from jax.experimental import pallas as pl
from jax.experimental.pallas import tpu as pltpu


# ----------------------------- Pallas kernels ------------------------------

def _deconv2x2_kernel(x_ref, w_ref, b_ref, o_ref):
    """ConvTranspose2d(k=2, s=2) as ONE stacked-tap MXU matmul.

    x_ref: (Cin, H*W)      f32 flattened input image (channels-first)
    w_ref: (4*Cmid, Cin)   bf16, rows ordered (kh, kw, co)
    b_ref: (4*Cmid, 1)     f32 (bias tiled over the 4 taps)
    o_ref: (4*Cmid, H*W)   bf16; o[(kh*2+kw)*Cmid + co, h*W+w] = up[co, 2h+kh, 2w+kw]
    """
    x = x_ref[...].astype(jnp.bfloat16)
    y = jnp.dot(w_ref[...], x, preferred_element_type=jnp.float32) + b_ref[...]
    o_ref[...] = y.astype(o_ref.dtype)


def _doubleconv_kernel(up_ref, x2_ref, w1_ref, b1_ref, w2_ref, b2_ref, o_ref,
                       cat_ref, h1p_ref, *, H2, W2, c_up):
    """concat + Conv3x3 + Conv3x3 + ReLU for one batch element, fully in VMEM.

    Activations are channels-first with flattened spatial (C, H2*W2) in bf16;
    the lane dim is the long axis.  cat_ref / h1p_ref carry ONE zero pad row
    above and below the image, so the 3 dy-shifted tap slabs are W2-aligned
    lane slices.  dx = +/-1 taps reuse the same aligned slabs: their partial
    sums are lane-shifted once per side (pltpu.roll) and edge-masked.
    """
    S = H2 * W2
    base = W2                          # one zero pad row above the image
    c_cat = cat_ref.shape[0]
    c_out = h1p_ref.shape[0]
    SP = cat_ref.shape[1]

    # Zero only the pad rows; the interior is fully overwritten right below.
    cat_ref[:, 0:base] = jnp.zeros((c_cat, base), cat_ref.dtype)
    cat_ref[:, base + S:SP] = jnp.zeros((c_cat, SP - base - S), cat_ref.dtype)
    h1p_ref[:, 0:base] = jnp.zeros((c_out, base), h1p_ref.dtype)
    h1p_ref[:, base + S:SP] = jnp.zeros((c_out, SP - base - S), h1p_ref.dtype)

    # Channel concat([up, x2]) directly in VMEM (bf16, never hits HBM).
    cat_ref[0:c_up, base:base + S] = up_ref[...]
    cat_ref[c_up:c_cat, base:base + S] = x2_ref[...].astype(cat_ref.dtype)

    # Column-edge masks built in-kernel (cheap VPU work hidden under MXU).
    col = lax.broadcasted_iota(jnp.int32, (1, S), 1) % W2
    m_left = col > 0                   # zero where image column == 0
    m_right = col < W2 - 1             # zero where image column == W2 - 1

    def conv3x3(src_ref, w_ref, b_ref):
        # The three dy-shifted source slabs are W2-aligned ref slices; load once
        # and reuse them for all 9 taps.
        rows = [src_ref[:, base + dy * W2: base + dy * W2 + S] for dy in (-1, 0, 1)]

        # dx == 0 taps accumulate straight into the output (bias added once).
        acc = jnp.zeros((c_out, S), jnp.float32) + b_ref[...]
        for dyi in range(3):
            acc += jnp.dot(w_ref[dyi * 3 + 1], rows[dyi],
                           preferred_element_type=jnp.float32)

        # dx == +/-1 taps: matmul against the SAME aligned slabs, then shift the
        # (c_out, S) partial sum by one lane and mask the wrapped edge column
        # (2 rolls + 2 masked selects per conv instead of 6 misaligned slabs).
        for dxi, dx, mask in ((0, -1, m_left), (2, 1, m_right)):
            part = jnp.zeros((c_out, S), jnp.float32)
            for dyi in range(3):
                part += jnp.dot(w_ref[dyi * 3 + dxi], rows[dyi],
                                preferred_element_type=jnp.float32)
            # contribution[:, s] = part[:, s + dx]; wrapped lanes are masked out.
            shifted = pltpu.roll(part, shift=(-dx) % S, axis=1)
            acc += jnp.where(mask, shifted, 0.0)
        return acc

    h1 = conv3x3(cat_ref, w1_ref, b1_ref)            # Conv2d(in_ch, out_ch), no ReLU
    h1p_ref[:, base:base + S] = h1.astype(h1p_ref.dtype)
    out = conv3x3(h1p_ref, w2_ref, b2_ref)           # Conv2d(out_ch, out_ch)
    o_ref[...] = jnp.maximum(out, 0.0).astype(o_ref.dtype)      # ReLU


# ------------------------------- Wrapper ------------------------------------

def _vmem_limit_bytes(block_bytes):
    """Scoped-VMEM request: double-buffered blocks + scratch + headroom."""
    return int(min(max(2 * block_bytes + (4 << 20), 32 << 20), 56 << 20))


def upsampling_forward(params, x1_nchw, x2_nchw):
    """Pallas implementation of UpSampling.forward (NCHW in, NCHW out)."""
    N, c_in, H, W = x1_nchw.shape
    c_up = c_in // 2
    c_x2 = x2_nchw.shape[1]
    H2, W2 = 2 * H, 2 * W
    S = H2 * W2
    SP = (H2 + 2) * W2                # flattened spatial + 1 pad row top/bottom
    c_out = params['w_c1'].shape[0]
    c_cat = params['w_c1'].shape[1]
    assert c_cat == c_up + c_x2

    # --- parameter re-layout (tiny, one-time); matmul operands in bf16 ---
    w_up = jnp.transpose(params['w_up'], (2, 3, 1, 0)).reshape(4 * c_up, c_in)
    w_up = w_up.astype(jnp.bfloat16)                              # rows = (kh,kw,co)
    b_up = jnp.tile(params['b_up'], 4).reshape(4 * c_up, 1).astype(jnp.float32)
    w1 = jnp.transpose(params['w_c1'], (2, 3, 0, 1)).reshape(9, c_out, c_cat)
    w1 = w1.astype(jnp.bfloat16)
    b1 = params['b_c1'].reshape(c_out, 1).astype(jnp.float32)
    w2 = jnp.transpose(params['w_c2'], (2, 3, 0, 1)).reshape(9, c_out, c_out)
    w2 = w2.astype(jnp.bfloat16)
    b2 = params['b_c2'].reshape(c_out, 1).astype(jnp.float32)

    # --- kernel 1: ConvTranspose2d(k=2, s=2) as one stacked-tap matmul ---
    x1f = x1_nchw.reshape(N, c_in, H * W)                         # free reshape
    k1_bytes = (c_in * H * W * 4 + 4 * c_up * c_in * 2 + 4 * c_up * 4
                + 4 * c_up * H * W * 2)
    up_taps = pl.pallas_call(
        _deconv2x2_kernel,
        out_shape=jax.ShapeDtypeStruct((N, 4 * c_up, H * W), jnp.bfloat16),
        grid=(N,),
        in_specs=[pl.BlockSpec((None, c_in, H * W), lambda n: (n, 0, 0)),
                  pl.BlockSpec((4 * c_up, c_in), lambda n: (0, 0)),
                  pl.BlockSpec((4 * c_up, 1), lambda n: (0, 0))],
        out_specs=pl.BlockSpec((None, 4 * c_up, H * W), lambda n: (n, 0, 0)),
        compiler_params=pltpu.CompilerParams(
            dimension_semantics=("parallel",),
            vmem_limit_bytes=_vmem_limit_bytes(k1_bytes)),
    )(x1f, w_up, b_up)

    # Pixel-shuffle the stride-2 taps into the upsampled image (now in bf16,
    # halving this remaining XLA pass).
    # TODO(synk): an in-VMEM stride-2 lane interleave would remove this pass
    # entirely, but interleaved/strided lane stores have no clean Mosaic
    # lowering, so the small bf16 shuffle stays in XLA.
    up = up_taps.reshape(N, 2, 2, c_up, H, W)
    up = jnp.transpose(up, (0, 3, 4, 1, 5, 2)).reshape(N, c_up, S)

    x2f = x2_nchw.reshape(N, c_x2, S)                             # free reshape

    # --- kernel 2: concat + Conv3x3 + Conv3x3 + ReLU, fused per batch ---
    # TODO(synk): for large spatial sizes add a halo'd row-tile grid axis
    # (grid=(N, n_row_tiles)) so scratch fits v7x's 64 MiB VMEM and both v7x
    # TensorCores get work when N == 1; K-stack the dy slabs once row-tiled.
    k2_bytes = (c_up * S * 2 + c_x2 * S * 4 + 9 * c_out * c_cat * 2
                + 9 * c_out * c_out * 2 + 2 * c_out * 4 + c_out * S * 4
                + c_cat * SP * 2 + c_out * SP * 2)
    out_flat = pl.pallas_call(
        functools.partial(_doubleconv_kernel, H2=H2, W2=W2, c_up=c_up),
        out_shape=jax.ShapeDtypeStruct((N, c_out, S), jnp.float32),
        grid=(N,),
        in_specs=[pl.BlockSpec((None, c_up, S), lambda n: (n, 0, 0)),
                  pl.BlockSpec((None, c_x2, S), lambda n: (n, 0, 0)),
                  pl.BlockSpec((9, c_out, c_cat), lambda n: (0, 0, 0)),
                  pl.BlockSpec((c_out, 1), lambda n: (0, 0)),
                  pl.BlockSpec((9, c_out, c_out), lambda n: (0, 0, 0)),
                  pl.BlockSpec((c_out, 1), lambda n: (0, 0))],
        out_specs=pl.BlockSpec((None, c_out, S), lambda n: (n, 0, 0)),
        scratch_shapes=[pltpu.VMEM((c_cat, SP), jnp.bfloat16),
                        pltpu.VMEM((c_out, SP), jnp.bfloat16)],
        compiler_params=pltpu.CompilerParams(
            dimension_semantics=("parallel",),
            vmem_limit_bytes=_vmem_limit_bytes(k2_bytes)),
    )(up, x2f, w1, b1, w2, b2)

    # Free reshape back to NCHW — no output transpose needed.
    return out_flat.reshape(N, c_out, H2, W2)


# ---------------------------- Pure-JAX reference ----------------------------

def upsampling_ref(params, x1, x2):
    N, c_in, H, W = x1.shape
    c_mid = c_in // 2
    H2, W2 = 2 * H, 2 * W
    # ConvTranspose2d(k=2, s=2): up[n,o,2h+kh,2w+kw] = b + sum_i x[n,i,h,w]*w[i,o,kh,kw]
    y = jnp.einsum('nihw,iokl->nohkwl', x1, params['w_up'])
    up = y.reshape(N, c_mid, H2, W2) + params['b_up'][None, :, None, None]
    cat = jnp.concatenate([up, x2], axis=1)

    def conv(x, w, b):
        return lax.conv_general_dilated(
            x, w, window_strides=(1, 1), padding=((1, 1), (1, 1)),
            dimension_numbers=('NCHW', 'OIHW', 'NCHW')) + b[None, :, None, None]

    h1 = conv(cat, params['w_c1'], params['b_c1'])
    return jnp.maximum(conv(h1, params['w_c2'], params['b_c2']), 0.0)


# ---------------------------------- Main -------------------------------------

if __name__ == "__main__":
    key = jax.random.PRNGKey(0)
    in_ch, out_ch = 32, 16
    N, H, W = 2, 8, 8            # x1 spatial; x2 / output spatial is 2H x 2W = 16 x 16
    ks = jax.random.split(key, 8)

    x1 = jax.random.normal(ks[0], (N, in_ch, H, W), jnp.float32)
    x2 = jax.random.normal(ks[1], (N, in_ch // 2, 2 * H, 2 * W), jnp.float32)

    params = {
        # ConvTranspose2d(in_ch, in_ch//2, 2, stride=2): weight (Cin, Cout, 2, 2)
        'w_up': jax.random.normal(ks[2], (in_ch, in_ch // 2, 2, 2), jnp.float32) * 0.1,
        'b_up': jax.random.normal(ks[3], (in_ch // 2,), jnp.float32) * 0.1,
        # Conv2d(in_ch, out_ch, 3, pad=1): OIHW
        'w_c1': jax.random.normal(ks[4], (out_ch, in_ch, 3, 3), jnp.float32) * 0.1,
        'b_c1': jax.random.normal(ks[5], (out_ch,), jnp.float32) * 0.1,
        # Conv2d(out_ch, out_ch, 3, pad=1): OIHW
        'w_c2': jax.random.normal(ks[6], (out_ch, out_ch, 3, 3), jnp.float32) * 0.1,
        'b_c2': jax.random.normal(ks[7], (out_ch,), jnp.float32) * 0.1,
    }

    out = jax.jit(upsampling_forward)(params, x1, x2)
    out = jax.block_until_ready(out)

    ref = upsampling_ref(params, x1, x2)
    assert out.shape == (N, out_ch, 2 * H, 2 * W), out.shape
    # bf16 MXU operands (f32 accumulation) vs an all-f32 reference -> loosened tol.
    max_err = float(jnp.max(jnp.abs(out - ref)))
    assert jnp.allclose(out, ref, atol=5e-2, rtol=5e-2), f"mismatch, max_err={max_err}"

    print("KERNEL_OK")
</pallas_src>

<mosaic_0001>
module attributes {stable_mosaic.version = 11 : i64} {
  func.func @_deconv2x2_kernel(%arg0: i32, %arg1: memref<1x32x64xf32, #tpu.memory_space<vmem>>, %arg2: memref<64x32xbf16, #tpu.memory_space<vmem>>, %arg3: memref<64x1xf32, #tpu.memory_space<vmem>>, %arg4: memref<1x64x64xbf16, #tpu.memory_space<vmem>>) attributes {dimension_semantics = [#tpu.dimension_semantics<parallel>], iteration_bounds = array<i64: 2>, scalar_prefetch = 0 : i64, scratch_operands = 0 : i64, tpu.core_type = #tpu.core_type<tc>, window_params = [{transform_indices = @transform_0, window_bounds = array<i64: 1, 32, 64>}, {pipeline_mode = #tpu.pipeline_mode<synchronous>, transform_indices = @transform_1, window_bounds = array<i64: 64, 32>}, {pipeline_mode = #tpu.pipeline_mode<synchronous>, transform_indices = @transform_2, window_bounds = array<i64: 64, 1>}, {transform_indices = @transform_3, window_bounds = array<i64: 1, 64, 64>}]} {
    %c0 = arith.constant 0 : index
    %c0_0 = arith.constant 0 : index
    %c0_1 = arith.constant 0 : index
    %0 = vector.load %arg1[%c0, %c0_0, %c0_1] : memref<1x32x64xf32, #tpu.memory_space<vmem>>, vector<1x32x64xf32>
    %1 = vector.shape_cast %0 : vector<1x32x64xf32> to vector<32x64xf32>
    %2 = arith.truncf %1 : vector<32x64xf32> to vector<32x64xbf16>
    %c0_2 = arith.constant 0 : index
    %c0_3 = arith.constant 0 : index
    %3 = vector.load %arg2[%c0_2, %c0_3] : memref<64x32xbf16, #tpu.memory_space<vmem>>, vector<64x32xbf16>
    %cst = arith.constant dense<0.000000e+00> : vector<64x64xf32>
    %4 = tpu.matmul %3, %2, %cst {dimension_numbers = #tpu.dot_dimension_numbers<[1], [0], [0], [1], [0, 0, 1, 1], [], []>} : vector<64x32xbf16>, vector<32x64xbf16>, vector<64x64xf32> -> vector<64x64xf32>
    %c0_4 = arith.constant 0 : index
    %c0_5 = arith.constant 0 : index
    %5 = vector.load %arg3[%c0_4, %c0_5] : memref<64x1xf32, #tpu.memory_space<vmem>>, vector<64x1xf32>
    %6 = vector.broadcast %5 : vector<64x1xf32> to vector<64x64xf32>
    %7 = arith.addf %4, %6 : vector<64x64xf32>
    %8 = arith.truncf %7 : vector<64x64xf32> to vector<64x64xbf16>
    %c0_6 = arith.constant 0 : index
    %c0_7 = arith.constant 0 : index
    %c0_8 = arith.constant 0 : index
    %9 = vector.load %arg4[%c0_6, %c0_7, %c0_8] : memref<1x64x64xbf16, #tpu.memory_space<vmem>>, vector<1x64x64xbf16>
    %10 = vector.shape_cast %9 : vector<1x64x64xbf16> to vector<64x64xbf16>
    %11 = vector.shape_cast %8 : vector<64x64xbf16> to vector<1x64x64xbf16>
    tpu.vector_store %arg4[%c0_6, %c0_7, %c0_8], %11 {strides = array<i32>} : memref<1x64x64xbf16, #tpu.memory_space<vmem>>, vector<1x64x64xbf16>,
    return
  }
  func.func @transform_0(%arg0: i32) -> (i32, i32, i32) {
    %c0_i32 = arith.constant 0 : i32
    %c0_i32_0 = arith.constant 0 : i32
    %c0_i32_1 = arith.constant 0 : i32
    return %arg0, %c0_i32, %c0_i32_0 : i32, i32, i32
  }
  func.func @transform_1(%arg0: i32) -> (i32, i32) {
    %c0_i32 = arith.constant 0 : i32
    %c0_i32_0 = arith.constant 0 : i32
    %c0_i32_1 = arith.constant 0 : i32
    return %c0_i32, %c0_i32_0 : i32, i32
  }
  func.func @transform_2(%arg0: i32) -> (i32, i32) {
    %c0_i32 = arith.constant 0 : i32
    %c0_i32_0 = arith.constant 0 : i32
    %c0_i32_1 = arith.constant 0 : i32
    return %c0_i32, %c0_i32_0 : i32, i32
  }
  func.func @transform_3(%arg0: i32) -> (i32, i32, i32) {
    %c0_i32 = arith.constant 0 : i32
    %c0_i32_0 = arith.constant 0 : i32
    %c0_i32_1 = arith.constant 0 : i32
    return %arg0, %c0_i32, %c0_i32_0 : i32, i32, i32
  }
}

module attributes {stable_mosaic.version = 11 : i64} {
  func.func @_doubleconv_kernel(%arg0: i32, %arg1: memref<1x16x256xbf16, #tpu.memory_space<vmem>>, %arg2: memref<1x16x256xf32, #tpu.memory_space<vmem>>, %arg3: memref<9x16x32xbf16, #tpu.memory_space<vmem>>, %arg4: memref<16x1xf32, #tpu.memory_space<vmem>>, %arg5: memref<9x16x16xbf16, #tpu.memory_space<vmem>>, %arg6: memref<16x1xf32, #tpu.memory_space<vmem>>, %arg7: memref<1x16x256xf32, #tpu.memory_space<vmem>>, %arg8: memref<32x288xbf16, #tpu.memory_space<vmem>>, %arg9: memref<16x288xbf16, #tpu.memory_space<vmem>>) attributes {dimension_semantics = [#tpu.dimension_semantics<parallel>], iteration_bounds = array<i64: 2>, scalar_prefetch = 0 : i64, scratch_operands = 2 : i64, tpu.core_type = #tpu.core_type<tc>, window_params = [{transform_indices = @transform_0, window_bounds = array<i64: 1, 16, 256>}, {transform_indices = @transform_1, window_bounds = array<i64: 1, 16, 256>}, {pipeline_mode = #tpu.pipeline_mode<synchronous>, transform_indices = @transform_2, window_bounds = array<i64: 9, 16, 32>}, {pipeline_mode = #tpu.pipeline_mode<synchronous>, transform_indices = @transform_3, window_bounds = array<i64: 16, 1>}, {pipeline_mode = #tpu.pipeline_mode<synchronous>, transform_indices = @transform_4, window_bounds = array<i64: 9, 16, 16>}, {pipeline_mode = #tpu.pipeline_mode<synchronous>, transform_indices = @transform_5, window_bounds = array<i64: 16, 1>}, {transform_indices = @transform_6, window_bounds = array<i64: 1, 16, 256>}]} {
    %cst = arith.constant 0.000000e+00 : bf16
    %0 = vector.broadcast %cst : bf16 to vector<32x16xbf16>
    %c0 = arith.constant 0 : index
    %c0_0 = arith.constant 0 : index
    %1 = vector.load %arg8[%c0, %c0_0] : memref<32x288xbf16, #tpu.memory_space<vmem>>, vector<32x16xbf16>
    tpu.vector_store %arg8[%c0, %c0_0], %0 {strides = array<i32>} : memref<32x288xbf16, #tpu.memory_space<vmem>>, vector<32x16xbf16>,
    %cst_1 = arith.constant 0.000000e+00 : bf16
    %2 = vector.broadcast %cst_1 : bf16 to vector<32x16xbf16>
    %c0_2 = arith.constant 0 : index
    %c272 = arith.constant 272 : index
    %3 = vector.load %arg8[%c0_2, %c272] : memref<32x288xbf16, #tpu.memory_space<vmem>>, vector<32x16xbf16>
    tpu.vector_store %arg8[%c0_2, %c272], %2 {strides = array<i32>} : memref<32x288xbf16, #tpu.memory_space<vmem>>, vector<32x16xbf16>,
    %cst_3 = arith.constant 0.000000e+00 : bf16
    %4 = vector.broadcast %cst_3 : bf16 to vector<16x16xbf16>
    %c0_4 = arith.constant 0 : index
    %c0_5 = arith.constant 0 : index
    %5 = vector.load %arg9[%c0_4, %c0_5] : memref<16x288xbf16, #tpu.memory_space<vmem>>, vector<16x16xbf16>
    tpu.vector_store %arg9[%c0_4, %c0_5], %4 {strides = array<i32>} : memref<16x288xbf16, #tpu.memory_space<vmem>>, vector<16x16xbf16>,
    %cst_6 = arith.constant 0.000000e+00 : bf16
    %6 = vector.broadcast %cst_6 : bf16 to vector<16x16xbf16>
    %c0_7 = arith.constant 0 : index
    %c272_8 = arith.constant 272 : index
    %7 = vector.load %arg9[%c0_7, %c272_8] : memref<16x288xbf16, #tpu.memory_space<vmem>>, vector<16x16xbf16>
    tpu.vector_store %arg9[%c0_7, %c272_8], %6 {strides = array<i32>} : memref<16x288xbf16, #tpu.memory_space<vmem>>, vector<16x16xbf16>,
    %c0_9 = arith.constant 0 : index
    %c0_10 = arith.constant 0 : index
    %c0_11 = arith.constant 0 : index
    %8 = vector.load %arg1[%c0_9, %c0_10, %c0_11] : memref<1x16x256xbf16, #tpu.memory_space<vmem>>, vector<1x16x256xbf16>
    %9 = vector.shape_cast %8 : vector<1x16x256xbf16> to vector<16x256xbf16>
    %c0_12 = arith.constant 0 : index
    %c16 = arith.constant 16 : index
    %10 = vector.load %arg8[%c0_12, %c16] : memref<32x288xbf16, #tpu.memory_space<vmem>>, vector<16x256xbf16>
    tpu.vector_store %arg8[%c0_12, %c16], %9 {strides = array<i32>} : memref<32x288xbf16, #tpu.memory_space<vmem>>, vector<16x256xbf16>,
    %c0_13 = arith.constant 0 : index
    %c0_14 = arith.constant 0 : index
    %c0_15 = arith.constant 0 : index
    %11 = vector.load %arg2[%c0_13, %c0_14, %c0_15] : memref<1x16x256xf32, #tpu.memory_space<vmem>>, vector<1x16x256xf32>
    %12 = vector.shape_cast %11 : vector<1x16x256xf32> to vector<16x256xf32>
    %13 = arith.truncf %12 : vector<16x256xf32> to vector<16x256xbf16>
    %c16_16 = arith.constant 16 : index
    %c16_17 = arith.constant 16 : index
    %14 = vector.load %arg8[%c16_16, %c16_17] : memref<32x288xbf16, #tpu.memory_space<vmem>>, vector<16x256xbf16>
    tpu.vector_store %arg8[%c16_16, %c16_17], %13 {strides = array<i32>} : memref<32x288xbf16, #tpu.memory_space<vmem>>, vector<16x256xbf16>,
    %15 = tpu.iota {dimensions = array<i32: 1>} : vector<1x256xi32>
    %c16_i32 = arith.constant 16 : i32
    %c0_i32 = arith.constant 0 : i32
    %16 = arith.cmpi eq, %c16_i32, %c0_i32 : i32
    %c1_i32 = arith.constant 1 : i32
    %17 = arith.select %16, %c1_i32, %c16_i32 : i32
    %18 = vector.broadcast %17 : i32 to vector<1x256xi32>
    %19 = arith.remsi %15, %18 : vector<1x256xi32>
    %c0_i32_18 = arith.constant 0 : i32
    %20 = vector.broadcast %c0_i32_18 : i32 to vector<1x256xi32>
    %21 = arith.cmpi ne, %19, %20 : vector<1x256xi32>
    %c0_i32_19 = arith.constant 0 : i32
    %22 = vector.broadcast %c0_i32_19 : i32 to vector<1x256xi32>
    %23 = arith.cmpi slt, %19, %22 : vector<1x256xi32>
    %c0_i32_20 = arith.constant 0 : i32
    %24 = arith.cmpi slt, %17, %c0_i32_20 : i32
    %25 = vector.broadcast %24 : i1 to vector<1x256xi1>
    %26 = vector.broadcast %25 : vector<1x256xi1> to vector<1x256xi1>
    %27 = arith.xori %23, %26 : vector<1x256xi1>
    %28 = arith.andi %27, %21 : vector<1x256xi1>
    %29 = vector.broadcast %17 : i32 to vector<1x256xi32>
    %30 = arith.addi %19, %29 : vector<1x256xi32>
    %31 = arith.select %28, %30, %19 : vector<1x256xi1>, vector<1x256xi32>
    %c0_i32_21 = arith.constant 0 : i32
    %32 = vector.broadcast %c0_i32_21 : i32 to vector<1x256xi32>
    %33 = arith.cmpi sgt, %31, %32 : vector<1x256xi32>
    %c15_i32 = arith.constant 15 : i32
    %34 = vector.broadcast %c15_i32 : i32 to vector<1x256xi32>
    %35 = arith.cmpi slt, %31, %34 : vector<1x256xi32>
    %c0_22 = arith.constant 0 : index
    %c0_23 = arith.constant 0 : index
    %36 = vector.load %arg8[%c0_22, %c0_23] : memref<32x288xbf16, #tpu.memory_space<vmem>>, vector<32x256xbf16>
    %c0_24 = arith.constant 0 : index
    %c16_25 = arith.constant 16 : index
    %37 = vector.load %arg8[%c0_24, %c16_25] : memref<32x288xbf16, #tpu.memory_space<vmem>>, vector<32x256xbf16>
    %c0_26 = arith.constant 0 : index
    %c32 = arith.constant 32 : index
    %38 = vector.load %arg8[%c0_26, %c32] : memref<32x288xbf16, #tpu.memory_space<vmem>>, vector<32x256xbf16>
    %cst_27 = arith.constant 0.000000e+00 : f32
    %39 = vector.broadcast %cst_27 : f32 to vector<16x256xf32>
    %c0_28 = arith.constant 0 : index
    %c0_29 = arith.constant 0 : index
    %40 = vector.load %arg4[%c0_28, %c0_29] : memref<16x1xf32, #tpu.memory_space<vmem>>, vector<16x1xf32>
    %41 = vector.broadcast %40 : vector<16x1xf32> to vector<16x256xf32>
    %42 = arith.addf %39, %41 : vector<16x256xf32>
    %c1 = arith.constant 1 : index
    %c0_30 = arith.constant 0 : index
    %c0_31 = arith.constant 0 : index
    %43 = vector.load %arg3[%c1, %c0_30, %c0_31] : memref<9x16x32xbf16, #tpu.memory_space<vmem>>, vector<1x16x32xbf16>
    %44 = vector.shape_cast %43 : vector<1x16x32xbf16> to vector<16x32xbf16>
    %cst_32 = arith.constant dense<0.000000e+00> : vector<16x256xf32>
    %45 = tpu.matmul %44, %36, %cst_32 {dimension_numbers = #tpu.dot_dimension_numbers<[1], [0], [0], [1], [0, 0, 1, 1], [], []>} : vector<16x32xbf16>, vector<32x256xbf16>, vector<16x256xf32> -> vector<16x256xf32>
    %46 = arith.addf %42, %45 : vector<16x256xf32>
    %c4 = arith.constant 4 : index
    %c0_33 = arith.constant 0 : index
    %c0_34 = arith.constant 0 : index
    %47 = vector.load %arg3[%c4, %c0_33, %c0_34] : memref<9x16x32xbf16, #tpu.memory_space<vmem>>, vector<1x16x32xbf16>
    %48 = vector.shape_cast %47 : vector<1x16x32xbf16> to vector<16x32xbf16>
    %cst_35 = arith.constant dense<0.000000e+00> : vector<16x256xf32>
    %49 = tpu.matmul %48, %37, %cst_35 {dimension_numbers = #tpu.dot_dimension_numbers<[1], [0], [0], [1], [0, 0, 1, 1], [], []>} : vector<16x32xbf16>, vector<32x256xbf16>, vector<16x256xf32> -> vector<16x256xf32>
    %50 = arith.addf %46, %49 : vector<16x256xf32>
    %c7 = arith.constant 7 : index
    %c0_36 = arith.constant 0 : index
    %c0_37 = arith.constant 0 : index
    %51 = vector.load %arg3[%c7, %c0_36, %c0_37] : memref<9x16x32xbf16, #tpu.memory_space<vmem>>, vector<1x16x32xbf16>
    %52 = vector.shape_cast %51 : vector<1x16x32xbf16> to vector<16x32xbf16>
    %cst_38 = arith.constant dense<0.000000e+00> : vector<16x256xf32>
    %53 = tpu.matmul %52, %38, %cst_38 {dimension_numbers = #tpu.dot_dimension_numbers<[1], [0], [0], [1], [0, 0, 1, 1], [], []>} : vector<16x32xbf16>, vector<32x256xbf16>, vector<16x256xf32> -> vector<16x256xf32>
    %54 = arith.addf %50, %53 : vector<16x256xf32>
    %cst_39 = arith.constant 0.000000e+00 : f32
    %55 = vector.broadcast %cst_39 : f32 to vector<16x256xf32>
    %c0_40 = arith.constant 0 : index
    %c0_41 = arith.constant 0 : index
    %c0_42 = arith.constant 0 : index
    %56 = vector.load %arg3[%c0_40, %c0_41, %c0_42] : memref<9x16x32xbf16, #tpu.memory_space<vmem>>, vector<1x16x32xbf16>
    %57 = vector.shape_cast %56 : vector<1x16x32xbf16> to vector<16x32xbf16>
    %cst_43 = arith.constant dense<0.000000e+00> : vector<16x256xf32>
    %58 = tpu.matmul %57, %36, %cst_43 {dimension_numbers = #tpu.dot_dimension_numbers<[1], [0], [0], [1], [0, 0, 1, 1], [], []>} : vector<16x32xbf16>, vector<32x256xbf16>, vector<16x256xf32> -> vector<16x256xf32>
    %59 = arith.addf %55, %58 : vector<16x256xf32>
    %c3 = arith.constant 3 : index
    %c0_44 = arith.constant 0 : index
    %c0_45 = arith.constant 0 : index
    %60 = vector.load %arg3[%c3, %c0_44, %c0_45] : memref<9x16x32xbf16, #tpu.memory_space<vmem>>, vector<1x16x32xbf16>
    %61 = vector.shape_cast %60 : vector<1x16x32xbf16> to vector<16x32xbf16>
    %cst_46 = arith.constant dense<0.000000e+00> : vector<16x256xf32>
    %62 = tpu.matmul %61, %37, %cst_46 {dimension_numbers = #tpu.dot_dimension_numbers<[1], [0], [0], [1], [0, 0, 1, 1], [], []>} : vector<16x32xbf16>, vector<32x256xbf16>, vector<16x256xf32> -> vector<16x256xf32>
    %63 = arith.addf %59, %62 : vector<16x256xf32>
    %c6 = arith.constant 6 : index
    %c0_47 = arith.constant 0 : index
    %c0_48 = arith.constant 0 : index
    %64 = vector.load %arg3[%c6, %c0_47, %c0_48] : memref<9x16x32xbf16, #tpu.memory_space<vmem>>, vector<1x16x32xbf16>
    %65 = vector.shape_cast %64 : vector<1x16x32xbf16> to vector<16x32xbf16>
    %cst_49 = arith.constant dense<0.000000e+00> : vector<16x256xf32>
    %66 = tpu.matmul %65, %38, %cst_49 {dimension_numbers = #tpu.dot_dimension_numbers<[1], [0], [0], [1], [0, 0, 1, 1], [], []>} : vector<16x32xbf16>, vector<32x256xbf16>, vector<16x256xf32> -> vector<16x256xf32>
    %67 = arith.addf %63, %66 : vector<16x256xf32>
    %c1_i32_50 = arith.constant 1 : i32
    %68 = tpu.dynamic_rotate %67 by %c1_i32_50 dim 1 : vector<16x256xf32>, i32 -> vector<16x256xf32>
    %cst_51 = arith.constant 0.000000e+00 : f32
    %69 = vector.shape_cast %33 : vector<1x256xi1> to vector<1x256xi1>
    %70 = vector.broadcast %69 : vector<1x256xi1> to vector<16x256xi1>
    %71 = vector.broadcast %cst_51 : f32 to vector<16x256xf32>
    %72 = arith.select %70, %68, %71 : vector<16x256xi1>, vector<16x256xf32>
    %73 = arith.addf %54, %72 : vector<16x256xf32>
    %cst_52 = arith.constant 0.000000e+00 : f32
    %74 = vector.broadcast %cst_52 : f32 to vector<16x256xf32>
    %c2 = arith.constant 2 : index
    %c0_53 = arith.constant 0 : index
    %c0_54 = arith.constant 0 : index
    %75 = vector.load %arg3[%c2, %c0_53, %c0_54] : memref<9x16x32xbf16, #tpu.memory_space<vmem>>, vector<1x16x32xbf16>
    %76 = vector.shape_cast %75 : vector<1x16x32xbf16> to vector<16x32xbf16>
    %cst_55 = arith.constant dense<0.000000e+00> : vector<16x256xf32>
    %77 = tpu.matmul %76, %36, %cst_55 {dimension_numbers = #tpu.dot_dimension_numbers<[1], [0], [0], [1], [0, 0, 1, 1], [], []>} : vector<16x32xbf16>, vector<32x256xbf16>, vector<16x256xf32> -> vector<16x256xf32>
    %78 = arith.addf %74, %77 : vector<16x256xf32>
    %c5 = arith.constant 5 : index
    %c0_56 = arith.constant 0 : index
    %c0_57 = arith.constant 0 : index
    %79 = vector.load %arg3[%c5, %c0_56, %c0_57] : memref<9x16x32xbf16, #tpu.memory_space<vmem>>, vector<1x16x32xbf16>
    %80 = vector.shape_cast %79 : vector<1x16x32xbf16> to vector<16x32xbf16>
    %cst_58 = arith.constant dense<0.000000e+00> : vector<16x256xf32>
    %81 = tpu.matmul %80, %37, %cst_58 {dimension_numbers = #tpu.dot_dimension_numbers<[1], [0], [0], [1], [0, 0, 1, 1], [], []>} : vector<16x32xbf16>, vector<32x256xbf16>, vector<16x256xf32> -> vector<16x256xf32>
    %82 = arith.addf %78, %81 : vector<16x256xf32>
    %c8 = arith.constant 8 : index
    %c0_59 = arith.constant 0 : index
    %c0_60 = arith.constant 0 : index
    %83 = vector.load %arg3[%c8, %c0_59, %c0_60] : memref<9x16x32xbf16, #tpu.memory_space<vmem>>, vector<1x16x32xbf16>
    %84 = vector.shape_cast %83 : vector<1x16x32xbf16> to vector<16x32xbf16>
    %cst_61 = arith.constant dense<0.000000e+00> : vector<16x256xf32>
    %85 = tpu.matmul %84, %38, %cst_61 {dimension_numbers = #tpu.dot_dimension_numbers<[1], [0], [0], [1], [0, 0, 1, 1], [], []>} : vector<16x32xbf16>, vector<32x256xbf16>, vector<16x256xf32> -> vector<16x256xf32>
    %86 = arith.addf %82, %85 : vector<16x256xf32>
    %c255_i32 = arith.constant 255 : i32
    %87 = tpu.dynamic_rotate %86 by %c255_i32 dim 1 : vector<16x256xf32>, i32 -> vector<16x256xf32>
    %cst_62 = arith.constant 0.000000e+00 : f32
    %88 = vector.shape_cast %35 : vector<1x256xi1> to vector<1x256xi1>
    %89 = vector.broadcast %88 : vector<1x256xi1> to vector<16x256xi1>
    %90 = vector.broadcast %cst_62 : f32 to vector<16x256xf32>
    %91 = arith.select %89, %87, %90 : vector<16x256xi1>, vector<16x256xf32>
    %92 = arith.addf %73, %91 : vector<16x256xf32>
    %93 = arith.truncf %92 : vector<16x256xf32> to vector<16x256xbf16>
    %c0_63 = arith.constant 0 : index
    %c16_64 = arith.constant 16 : index
    %94 = vector.load %arg9[%c0_63, %c16_64] : memref<16x288xbf16, #tpu.memory_space<vmem>>, vector<16x256xbf16>
    tpu.vector_store %arg9[%c0_63, %c16_64], %93 {strides = array<i32>} : memref<16x288xbf16, #tpu.memory_space<vmem>>, vector<16x256xbf16>,
    %c0_65 = arith.constant 0 : index
    %c0_66 = arith.constant 0 : index
    %95 = vector.load %arg9[%c0_65, %c0_66] : memref<16x288xbf16, #tpu.memory_space<vmem>>, vector<16x256xbf16>
    %c0_67 = arith.constant 0 : index
    %c16_68 = arith.constant 16 : index
    %96 = vector.load %arg9[%c0_67, %c16_68] : memref<16x288xbf16, #tpu.memory_space<vmem>>, vector<16x256xbf16>
    %c0_69 = arith.constant 0 : index
    %c32_70 = arith.constant 32 : index
    %97 = vector.load %arg9[%c0_69, %c32_70] : memref<16x288xbf16, #tpu.memory_space<vmem>>, vector<16x256xbf16>
    %cst_71 = arith.constant 0.000000e+00 : f32
    %98 = vector.broadcast %cst_71 : f32 to vector<16x256xf32>
    %c0_72 = arith.constant 0 : index
    %c0_73 = arith.constant 0 : index
    %99 = vector.load %arg6[%c0_72, %c0_73] : memref<16x1xf32, #tpu.memory_space<vmem>>, vector<16x1xf32>
    %100 = vector.broadcast %99 : vector<16x1xf32> to vector<16x256xf32>
    %101 = arith.addf %98, %100 : vector<16x256xf32>
    %c1_74 = arith.constant 1 : index
    %c0_75 = arith.constant 0 : index
    %c0_76 = arith.constant 0 : index
    %102 = vector.load %arg5[%c1_74, %c0_75, %c0_76] : memref<9x16x16xbf16, #tpu.memory_space<vmem>>, vector<1x16x16xbf16>
    %103 = vector.shape_cast %102 : vector<1x16x16xbf16> to vector<16x16xbf16>
    %cst_77 = arith.constant dense<0.000000e+00> : vector<16x256xf32>
    %104 = tpu.matmul %103, %95, %cst_77 {dimension_numbers = #tpu.dot_dimension_numbers<[1], [0], [0], [1], [0, 0, 1, 1], [], []>} : vector<16x16xbf16>, vector<16x256xbf16>, vector<16x256xf32> -> vector<16x256xf32>
    %105 = arith.addf %101, %104 : vector<16x256xf32>
    %c4_78 = arith.constant 4 : index
    %c0_79 = arith.constant 0 : index
    %c0_80 = arith.constant 0 : index
    %106 = vector.load %arg5[%c4_78, %c0_79, %c0_80] : memref<9x16x16xbf16, #tpu.memory_space<vmem>>, vector<1x16x16xbf16>
    %107 = vector.shape_cast %106 : vector<1x16x16xbf16> to vector<16x16xbf16>
    %cst_81 = arith.constant dense<0.000000e+00> : vector<16x256xf32>
    %108 = tpu.matmul %107, %96, %cst_81 {dimension_numbers = #tpu.dot_dimension_numbers<[1], [0], [0], [1], [0, 0, 1, 1], [], []>} : vector<16x16xbf16>, vector<16x256xbf16>, vector<16x256xf32> -> vector<16x256xf32>
    %109 = arith.addf %105, %108 : vector<16x256xf32>
    %c7_82 = arith.constant 7 : index
    %c0_83 = arith.constant 0 : index
    %c0_84 = arith.constant 0 : index
    %110 = vector.load %arg5[%c7_82, %c0_83, %c0_84] : memref<9x16x16xbf16, #tpu.memory_space<vmem>>, vector<1x16x16xbf16>
    %111 = vector.shape_cast %110 : vector<1x16x16xbf16> to vector<16x16xbf16>
    %cst_85 = arith.constant dense<0.000000e+00> : vector<16x256xf32>
    %112 = tpu.matmul %111, %97, %cst_85 {dimension_numbers = #tpu.dot_dimension_numbers<[1], [0], [0], [1], [0, 0, 1, 1], [], []>} : vector<16x16xbf16>, vector<16x256xbf16>, vector<16x256xf32> -> vector<16x256xf32>
    %113 = arith.addf %109, %112 : vector<16x256xf32>
    %cst_86 = arith.constant 0.000000e+00 : f32
    %114 = vector.broadcast %cst_86 : f32 to vector<16x256xf32>
    %c0_87 = arith.constant 0 : index
    %c0_88 = arith.constant 0 : index
    %c0_89 = arith.constant 0 : index
    %115 = vector.load %arg5[%c0_87, %c0_88, %c0_89] : memref<9x16x16xbf16, #tpu.memory_space<vmem>>, vector<1x16x16xbf16>
    %116 = vector.shape_cast %115 : vector<1x16x16xbf16> to vector<16x16xbf16>
    %cst_90 = arith.constant dense<0.000000e+00> : vector<16x256xf32>
    %117 = tpu.matmul %116, %95, %cst_90 {dimension_numbers = #tpu.dot_dimension_numbers<[1], [0], [0], [1], [0, 0, 1, 1], [], []>} : vector<16x16xbf16>, vector<16x256xbf16>, vector<16x256xf32> -> vector<16x256xf32>
    %118 = arith.addf %114, %117 : vector<16x256xf32>
    %c3_91 = arith.constant 3 : index
    %c0_92 = arith.constant 0 : index
    %c0_93 = arith.constant 0 : index
    %119 = vector.load %arg5[%c3_91, %c0_92, %c0_93] : memref<9x16x16xbf16, #tpu.memory_space<vmem>>, vector<1x16x16xbf16>
    %120 = vector.shape_cast %119 : vector<1x16x16xbf16> to vector<16x16xbf16>
    %cst_94 = arith.constant dense<0.000000e+00> : vector<16x256xf32>
    %121 = tpu.matmul %120, %96, %cst_94 {dimension_numbers = #tpu.dot_dimension_numbers<[1], [0], [0], [1], [0, 0, 1, 1], [], []>} : vector<16x16xbf16>, vector<16x256xbf16>, vector<16x256xf32> -> vector<16x256xf32>
    %122 = arith.addf %118, %121 : vector<16x256xf32>
    %c6_95 = arith.constant 6 : index
    %c0_96 = arith.constant 0 : index
    %c0_97 = arith.constant 0 : index
    %123 = vector.load %arg5[%c6_95, %c0_96, %c0_97] : memref<9x16x16xbf16, #tpu.memory_space<vmem>>, vector<1x16x16xbf16>
    %124 = vector.shape_cast %123 : vector<1x16x16xbf16> to vector<16x16xbf16>
    %cst_98 = arith.constant dense<0.000000e+00> : vector<16x256xf32>
    %125 = tpu.matmul %124, %97, %cst_98 {dimension_numbers = #tpu.dot_dimension_numbers<[1], [0], [0], [1], [0, 0, 1, 1], [], []>} : vector<16x16xbf16>, vector<16x256xbf16>, vector<16x256xf32> -> vector<16x256xf32>
    %126 = arith.addf %122, %125 : vector<16x256xf32>
    %c1_i32_99 = arith.constant 1 : i32
    %127 = tpu.dynamic_rotate %126 by %c1_i32_99 dim 1 : vector<16x256xf32>, i32 -> vector<16x256xf32>
    %cst_100 = arith.constant 0.000000e+00 : f32
    %128 = vector.shape_cast %33 : vector<1x256xi1> to vector<1x256xi1>
    %129 = vector.broadcast %128 : vector<1x256xi1> to vector<16x256xi1>
    %130 = vector.broadcast %cst_100 : f32 to vector<16x256xf32>
    %131 = arith.select %129, %127, %130 : vector<16x256xi1>, vector<16x256xf32>
    %132 = arith.addf %113, %131 : vector<16x256xf32>
    %cst_101 = arith.constant 0.000000e+00 : f32
    %133 = vector.broadcast %cst_101 : f32 to vector<16x256xf32>
    %c2_102 = arith.constant 2 : index
    %c0_103 = arith.constant 0 : index
    %c0_104 = arith.constant 0 : index
    %134 = vector.load %arg5[%c2_102, %c0_103, %c0_104] : memref<9x16x16xbf16, #tpu.memory_space<vmem>>, vector<1x16x16xbf16>
    %135 = vector.shape_cast %134 : vector<1x16x16xbf16> to vector<16x16xbf16>
    %cst_105 = arith.constant dense<0.000000e+00> : vector<16x256xf32>
    %136 = tpu.matmul %135, %95, %cst_105 {dimension_numbers = #tpu.dot_dimension_numbers<[1], [0], [0], [1], [0, 0, 1, 1], [], []>} : vector<16x16xbf16>, vector<16x256xbf16>, vector<16x256xf32> -> vector<16x256xf32>
    %137 = arith.addf %133, %136 : vector<16x256xf32>
    %c5_106 = arith.constant 5 : index
    %c0_107 = arith.constant 0 : index
    %c0_108 = arith.constant 0 : index
    %138 = vector.load %arg5[%c5_106, %c0_107, %c0_108] : memref<9x16x16xbf16, #tpu.memory_space<vmem>>, vector<1x16x16xbf16>
    %139 = vector.shape_cast %138 : vector<1x16x16xbf16> to vector<16x16xbf16>
    %cst_109 = arith.constant dense<0.000000e+00> : vector<16x256xf32>
    %140 = tpu.matmul %139, %96, %cst_109 {dimension_numbers = #tpu.dot_dimension_numbers<[1], [0], [0], [1], [0, 0, 1, 1], [], []>} : vector<16x16xbf16>, vector<16x256xbf16>, vector<16x256xf32> -> vector<16x256xf32>
    %141 = arith.addf %137, %140 : vector<16x256xf32>
    %c8_110 = arith.constant 8 : index
    %c0_111 = arith.constant 0 : index
    %c0_112 = arith.constant 0 : index
    %142 = vector.load %arg5[%c8_110, %c0_111, %c0_112] : memref<9x16x16xbf16, #tpu.memory_space<vmem>>, vector<1x16x16xbf16>
    %143 = vector.shape_cast %142 : vector<1x16x16xbf16> to vector<16x16xbf16>
    %cst_113 = arith.constant dense<0.000000e+00> : vector<16x256xf32>
    %144 = tpu.matmul %143, %97, %cst_113 {dimension_numbers = #tpu.dot_dimension_numbers<[1], [0], [0], [1], [0, 0, 1, 1], [], []>} : vector<16x16xbf16>, vector<16x256xbf16>, vector<16x256xf32> -> vector<16x256xf32>
    %145 = arith.addf %141, %144 : vector<16x256xf32>
    %c255_i32_114 = arith.constant 255 : i32
    %146 = tpu.dynamic_rotate %145 by %c255_i32_114 dim 1 : vector<16x256xf32>, i32 -> vector<16x256xf32>
    %cst_115 = arith.constant 0.000000e+00 : f32
    %147 = vector.shape_cast %35 : vector<1x256xi1> to vector<1x256xi1>
    %148 = vector.broadcast %147 : vector<1x256xi1> to vector<16x256xi1>
    %149 = vector.broadcast %cst_115 : f32 to vector<16x256xf32>
    %150 = arith.select %148, %146, %149 : vector<16x256xi1>, vector<16x256xf32>
    %151 = arith.addf %132, %150 : vector<16x256xf32>
    %cst_116 = arith.constant 0.000000e+00 : f32
    %152 = vector.broadcast %cst_116 : f32 to vector<16x256xf32>
    %153 = arith.maximumf %151, %152 : vector<16x256xf32>
    %c0_117 = arith.constant 0 : index
    %c0_118 = arith.constant 0 : index
    %c0_119 = arith.constant 0 : index
    %154 = vector.load %arg7[%c0_117, %c0_118, %c0_119] : memref<1x16x256xf32, #tpu.memory_space<vmem>>, vector<1x16x256xf32>
    %155 = vector.shape_cast %154 : vector<1x16x256xf32> to vector<16x256xf32>
    %156 = vector.shape_cast %153 : vector<16x256xf32> to vector<1x16x256xf32>
    tpu.vector_store %arg7[%c0_117, %c0_118, %c0_119], %156 {strides = array<i32>} : memref<1x16x256xf32, #tpu.memory_space<vmem>>, vector<1x16x256xf32>,
    return
  }
  func.func @transform_0(%arg0: i32) -> (i32, i32, i32) {
    %c0_i32 = arith.constant 0 : i32
    %c0_i32_0 = arith.constant 0 : i32
    %c0_i32_1 = arith.constant 0 : i32
    return %arg0, %c0_i32, %c0_i32_0 : i32, i32, i32
  }
  func.func @transform_1(%arg0: i32) -> (i32, i32, i32) {
    %c0_i32 = arith.constant 0 : i32
    %c0_i32_0 = arith.constant 0 : i32
    %c0_i32_1 = arith.constant 0 : i32
    return %arg0, %c0_i32, %c0_i32_0 : i32, i32, i32
  }
  func.func @transform_2(%arg0: i32) -> (i32, i32, i32) {
    %c0_i32 = arith.constant 0 : i32
    %c0_i32_0 = arith.constant 0 : i32
    %c0_i32_1 = arith.constant 0 : i32
    %c0_i32_2 = arith.constant 0 : i32
    return %c0_i32, %c0_i32_0, %c0_i32_1 : i32, i32, i32
  }
  func.func @transform_3(%arg0: i32) -> (i32, i32) {
    %c0_i32 = arith.constant 0 : i32
    %c0_i32_0 = arith.constant 0 : i32
    %c0_i32_1 = arith.constant 0 : i32
    return %c0_i32, %c0_i32_0 : i32, i32
  }
  func.func @transform_4(%arg0: i32) -> (i32, i32, i32) {
    %c0_i32 = arith.constant 0 : i32
    %c0_i32_0 = arith.constant 0 : i32
    %c0_i32_1 = arith.constant 0 : i32
    %c0_i32_2 = arith.constant 0 : i32
    return %c0_i32, %c0_i32_0, %c0_i32_1 : i32, i32, i32
  }
  func.func @transform_5(%arg0: i32) -> (i32, i32) {
    %c0_i32 = arith.constant 0 : i32
    %c0_i32_0 = arith.constant 0 : i32
    %c0_i32_1 = arith.constant 0 : i32
    return %c0_i32, %c0_i32_0 : i32, i32
  }
  func.func @transform_6(%arg0: i32) -> (i32, i32, i32) {
    %c0_i32 = arith.constant 0 : i32
    %c0_i32_0 = arith.constant 0 : i32
    %c0_i32_1 = arith.constant 0 : i32
    return %arg0, %c0_i32, %c0_i32_0 : i32, i32, i32
  }
}

</mosaic_0001>

<bundles_post_ra>
// kernel: tile.8
= control target key start
LH: loop header
LB: loop body
LE: loop exit
PB: predicated region body
PF: predicated region fallthrough
CT: control target
= control target key end

     0   :  { %s22_s0 = inlined_call_operand.vmem [shape: f32[16], index: 0, kind: input, shape index: {}]   ;;  %s23_s1 = inlined_call_operand.vmem [shape: f32[4,16], index: 1, kind: output, shape index: {}]  }
   0x1   :  { %v4_v0 = vld [vmem:[%s22_s0] ss:$0 sm:$0xff] }
   0x2   :  { %5 = vst [vmem:[%s23_s1] sm:$0xf] %v4_v0 }

// kernel: tile.0
= control target key start
LH: loop header
LB: loop body
LE: loop exit
PB: predicated region body
PF: predicated region fallthrough
CT: control target
= control target key end

     0   :  { %s177_s8 = smov 125   ;;  %s178_s9 = smov 126   ;;  %vm8_vm0 = vcmask 7168   ;;  %s332_s0 = inlined_call_operand.vmem [shape: f32[4,16], index: 0, kind: input, shape index: {}]   ;;  %s333_s1 = inlined_call_operand.vmem [shape: f32[64,1], index: 1, kind: output, shape index: {}]  }
   0x1   :  { %v5_v0 = vld [vmem:[%s332_s0] sm:$0xf]  ;;  %s176_s0 = smov 127   ;;  %s179_s10 = smov 124  }
   0x2   :  { %6 = vst [vmem:[#allocation0] sm:$0xf] %v5_v0  ;;  %s180_s11 = smov 123   ;;  %s181_s12 = smov 122  }
   0x3   :  { %s182_s13 = smov 121   ;;  %s183_s14 = smov 120  }
   0x4   :  { %s184_s19 = smov 119   ;;  %s185_s20 = smov 118  }
   0x5   :  { %s186_s21 = smov 117   ;;  %s187_s22 = smov 116  }
   0x6   :  { %s188_s23 = smov 115   ;;  %s189_s24 = smov 114  }
   0x7   :  { %s190_s25 = smov 113  }
   0x9   :  { %v11_v1 = vld [vmem:[#allocation0] sm:$0xf]  }
   0xa   :  { %v27_v2 = vld [vmem:[#allocation0] sm:$0xf]   ;;  %12 = vrot.lane.b32.xlu0 %v11_v1, %s176_s0 }
   0xb   :  { %28 = vrot.lane.b32.xlu1 %v27_v2, %s177_s8  ;;  %v19_v3 = vld [vmem:[#allocation0] sm:$0xf]  }
   0xc   :  { %v35_v4 = vld [vmem:[#allocation0] sm:$0xf]  }
   0xd   :  { %v43_v5 = vld [vmem:[#allocation0] sm:$0xf]  }
   0xe   :  { %20 = vrot.lane.b32.xlu0 %v19_v3, %s178_s9  ;;  %v51_v6 = vld [vmem:[#allocation0] sm:$0xf]  }
   0xf   :  { %36 = vrot.lane.b32.xlu1 %v35_v4, %s179_s10  ;;  %v59_v7 = vld [vmem:[#allocation0] sm:$0xf]  }
  0x10   :  { %v67_v8 = vld [vmem:[#allocation0] sm:$0xf]  }
  0x11   :  { %v75_v9 = vld [vmem:[#allocation0] sm:$0xf]  }
  0x12   :  { %44 = vrot.lane.b32.xlu0 %v43_v5, %s180_s11  ;;  %v83_v10 = vld [vmem:[#allocation0] sm:$0xf]  }
  0x13   :  { %52 = vrot.lane.b32.xlu1 %v51_v6, %s181_s12  ;;  %v7_v11 = vld [vmem:[#allocation0] sm:$0xf]  }
  0x14   :  { %9 = vst.msk [vmem:[%s333_s1] ss:$16 sm:$0x3] %vm8_vm0, %v7_v11   ;;  %10 = vst.msk [vmem:[%s333_s1] ss:$16 sm:$0xc] %vm8_vm0, %v7_v11  }
  0x15   :  { %v91_v12 = vld [vmem:[#allocation0] sm:$0xf]  }
  0x16   :  { %60 = vrot.lane.b32.xlu0 %v59_v7, %s182_s13  ;;  %v99_v13 = vld [vmem:[#allocation0] sm:$0xf]  }
  0x17   :  { %68 = vrot.lane.b32.xlu1 %v67_v8, %s183_s14  ;;  %v107_v14 = vld [vmem:[#allocation0] sm:$0xf]  }
  0x18   :  { %v115_v15 = vld [vmem:[#allocation0] sm:$0xf]  }
  0x19   :  { %v123_v16 = vld [vmem:[#allocation0] sm:$0xf]  }
  0x1a   :  { %76 = vrot.lane.b32.xlu0 %v75_v9, %s184_s19 }
  0x1b   :  { %84 = vrot.lane.b32.xlu1 %v83_v10, %s185_s20 }
  0x1e   :  { %92 = vrot.lane.b32.xlu0 %v91_v12, %s186_s21 }
  0x1f   :  { %100 = vrot.lane.b32.xlu1 %v99_v13, %s187_s22 }
  0x22   :  { %108 = vrot.lane.b32.xlu0 %v107_v14, %s188_s23 }
  0x23   :  { %116 = vrot.lane.b32.xlu1 %v115_v15, %s189_s24 }
  0x26   :  { %124 = vrot.lane.b32.xlu0 %v123_v16, %s190_s25 }
  0x7c   :  { %v13_v17 = vpop.permute.xlu0 %12  }
  0x7d   :  { %v29_v18 = vpop.permute.xlu1 %28   ;;  %131 = vst.msk [vmem:[%s333_s1 + $0x1] ss:$16 sm:$0x3] %vm8_vm0, %v13_v17   ;;  %132 = vst.msk [vmem:[%s333_s1 + $0x1] ss:$16 sm:$0xc] %vm8_vm0, %v13_v17  }
  0x7e   :  { %135 = vst.msk [vmem:[%s333_s1 + $0x3] ss:$16 sm:$0x3] %vm8_vm0, %v29_v18   ;;  %136 = vst.msk [vmem:[%s333_s1 + $0x3] ss:$16 sm:$0xc] %vm8_vm0, %v29_v18  }
  0x80   :  { %v21_v19 = vpop.permute.xlu0 %20  }
  0x81   :  { %v37_v20 = vpop.permute.xlu1 %36   ;;  %133 = vst.msk [vmem:[%s333_s1 + $0x2] ss:$16 sm:$0x3] %vm8_vm0, %v21_v19   ;;  %134 = vst.msk [vmem:[%s333_s1 + $0x2] ss:$16 sm:$0xc] %vm8_vm0, %v21_v19  }
  0x82   :  { %137 = vst.msk [vmem:[%s333_s1 + $0x4] ss:$16 sm:$0x3] %vm8_vm0, %v37_v20   ;;  %138 = vst.msk [vmem:[%s333_s1 + $0x4] ss:$16 sm:$0xc] %vm8_vm0, %v37_v20  }
  0x84   :  { %v45_v21 = vpop.permute.xlu0 %44  }
  0x85   :  { %v53_v22 = vpop.permute.xlu1 %52   ;;  %139 = vst.msk [vmem:[%s333_s1 + $0x5] ss:$16 sm:$0x3] %vm8_vm0, %v45_v21   ;;  %140 = vst.msk [vmem:[%s333_s1 + $0x5] ss:$16 sm:$0xc] %vm8_vm0, %v45_v21  }
  0x86   :  { %141 = vst.msk [vmem:[%s333_s1 + $0x6] ss:$16 sm:$0x3] %vm8_vm0, %v53_v22   ;;  %142 = vst.msk [vmem:[%s333_s1 + $0x6] ss:$16 sm:$0xc] %vm8_vm0, %v53_v22  }
  0x88   :  { %v61_v23 = vpop.permute.xlu0 %60  }
  0x89   :  { %v69_v24 = vpop.permute.xlu1 %68   ;;  %143 = vst.msk [vmem:[%s333_s1 + $0x7] ss:$16 sm:$0x3] %vm8_vm0, %v61_v23   ;;  %144 = vst.msk [vmem:[%s333_s1 + $0x7] ss:$16 sm:$0xc] %vm8_vm0, %v61_v23  }
  0x8a   :  { %145 = vst.msk [vmem:[%s333_s1 + $0x8] ss:$16 sm:$0x3] %vm8_vm0, %v69_v24   ;;  %146 = vst.msk [vmem:[%s333_s1 + $0x8] ss:$16 sm:$0xc] %vm8_vm0, %v69_v24  }
  0x8c   :  { %v77_v25 = vpop.permute.xlu0 %76  }
  0x8d   :  { %v85_v26 = vpop.permute.xlu1 %84   ;;  %147 = vst.msk [vmem:[%s333_s1 + $0x9] ss:$16 sm:$0x3] %vm8_vm0, %v77_v25   ;;  %148 = vst.msk [vmem:[%s333_s1 + $0x9] ss:$16 sm:$0xc] %vm8_vm0, %v77_v25  }
  0x8e   :  { %149 = vst.msk [vmem:[%s333_s1 + $0xa] ss:$16 sm:$0x3] %vm8_vm0, %v85_v26   ;;  %150 = vst.msk [vmem:[%s333_s1 + $0xa] ss:$16 sm:$0xc] %vm8_vm0, %v85_v26  }
  0x90   :  { %v93_v27 = vpop.permute.xlu0 %92  }
  0x91   :  { %v101_v28 = vpop.permute.xlu1 %100   ;;  %151 = vst.msk [vmem:[%s333_s1 + $0xb] ss:$16 sm:$0x3] %vm8_vm0, %v93_v27   ;;  %152 = vst.msk [vmem:[%s333_s1 + $0xb] ss:$16 sm:$0xc] %vm8_vm0, %v93_v27  }
  0x92   :  { %153 = vst.msk [vmem:[%s333_s1 + $0xc] ss:$16 sm:$0x3] %vm8_vm0, %v101_v28   ;;  %154 = vst.msk [vmem:[%s333_s1 + $0xc] ss:$16 sm:$0xc] %vm8_vm0, %v101_v28  }
  0x94   :  { %v109_v29 = vpop.permute.xlu0 %108  }
  0x95   :  { %v117_v30 = vpop.permute.xlu1 %116   ;;  %155 = vst.msk [vmem:[%s333_s1 + $0xd] ss:$16 sm:$0x3] %vm8_vm0, %v109_v29   ;;  %156 = vst.msk [vmem:[%s333_s1 + $0xd] ss:$16 sm:$0xc] %vm8_vm0, %v109_v29  }
  0x96   :  { %157 = vst.msk [vmem:[%s333_s1 + $0xe] ss:$16 sm:$0x3] %vm8_vm0, %v117_v30   ;;  %158 = vst.msk [vmem:[%s333_s1 + $0xe] ss:$16 sm:$0xc] %vm8_vm0, %v117_v30  }
  0x98   :  { %v125_v31 = vpop.permute.xlu0 %124  }
  0x99   :  { %159 = vst.msk [vmem:[%s333_s1 + $0xf] ss:$16 sm:$0x3] %vm8_vm0, %v125_v31   ;;  %160 = vst.msk [vmem:[%s333_s1 + $0xf] ss:$16 sm:$0xc] %vm8_vm0, %v125_v31  }

// kernel: upsampling_forward.2
= control target key start
LH: loop header
LB: loop body
LE: loop exit
PB: predicated region body
PF: predicated region fallthrough
CT: control target
= control target key end

     0   :  { %s531_s12 = smov 0   ;;  %s603_s0 = inlined_call_operand.vmem [shape: f32[2,32,64], index: 0, kind: input, shape index: {}]   ;;  %s604_s1 = inlined_call_operand.vmem [shape: bf16[64,32], index: 1, kind: input, shape index: {}]   ;;  %s605_s2 = inlined_call_operand.vmem [shape: f32[64,1], index: 2, kind: input, shape index: {}]   ;;  %s606_s3 = inlined_call_operand.vmem [shape: bf16[2,64,64], index: 3, kind: output, shape index: {}]  }
   0x1 LB: > { %s428_s13 = sadd.s32 4294967295, %s508_s12   ;;  %p432_p0 = scmp.ge.s32.totalorder %s508_s12, 1  ;;  %s508_s12 = sphi %s531_s12, %s13_s12  }
   0x2   : > { %p137_p1 = scmp.lt.s32.totalorder %s508_s12, 3 }
   0x4   : > { %p138_p2 = pnand %p432_p0, %p137_p1 }
   0x5   : > { %p161_p3 = scmp.lt.s32.totalorder (!%p138_p2), %s428_s13, 1 }
   0x6   : > { %141 = sbr.rel (%p138_p2) target bundleno = 229 (0xe5), region = 32 }
   0xb   : > { %v498_v0 = vld [vmem:[%s604_s1] sm:$0xff]   ;;  %vm254_vm0 = vcmask 261120   ;;  %v499_v1 = vld [vmem:[%s604_s1 + $0x10] sm:$0xff]   ;;  %s608_s13 = smov (!%p161_p3, %s428_s13), 1  ;;  %v510_v2 = vmov 0   ;;  %v189_v11 = vld [vmem:[%s605_s2 + $0x18] sm:$0xff] }
   0xc   : > { %475 = vmatprep.mubr.msk.bf16.mxu0 %vm254_vm0, %v498_v0  ;;  %479 = vmatprep.mubr.msk.bf16.mxu1 %vm254_vm0, %v499_v1  ;;  %s455_s18 = sshll.u32 %s608_s13, 5  ;;  %v188_v3 = vld [vmem:[%s605_s2 + $0x10] sm:$0xff]  ;;  %v186_v4 = vld [vmem:[%s605_s2] sm:$0xff]  ;;  %v187_v12 = vld [vmem:[%s605_s2 + $0x8] sm:$0xff]  ;;  %vm364_vm1 = vcmask 519168  }
   0xd   : > { %497 = vset.pattern.permute.xlu1 %v510_v2  ;;  %496 = vset.pattern.permute.xlu0 %v510_v2  ;;  %s165_s25 = scalar_lea.vmem %s603_s0, %s455_s18  ;;  %v500_v13 = vld [vmem:[%s604_s1 + $0x8] sm:$0xff]   ;;  %v501_v14 = vld [vmem:[%s604_s1 + $0x18] sm:$0xff]   ;;  %v190_v16 = vld [vmem:[%s605_s2 + $0x20] sm:$0xff]  ;;  %s170_s20 = scalar_lea.vmem %s606_s3, %s455_s18 }
   0xe   : > { %206 = vperm.xlu1 %497, %v188_v3   ;;  %196 = vperm.xlu0 %496, %v186_v4   ;;  %v174_v5 = vld [vmem:[%s165_s25 + $0x10] sm:$0xff]  ;;  %v175_v6 = vld [vmem:[%s165_s25 + $0x18] sm:$0xff]  ;;  %v172_v7 = vld [vmem:[%s165_s25] sm:$0xff] }
   0xf   : > { %v177_v8 = vpack.c.bf16 %v175_v6, %v174_v5  ;;  %v173_v9 = vld [vmem:[%s165_s25 + $0x8] sm:$0xff]  ;;  %v193_v17 = vld [vmem:[%s605_s2 + $0x38] sm:$0xff]  ;;  %v192_v18 = vld [vmem:[%s605_s2 + $0x30] sm:$0xff] }
  0x10   : > { %v176_v10 = vpack.c.bf16 %v173_v9, %v172_v7  ;;  %v191_v15 = vld [vmem:[%s605_s2 + $0x28] sm:$0xff] }
  0x11   : > { %471 = vmatprep.subr.bf16.mxu0 %v177_v8  ;;  %483 = vmatprep.subr.bf16.mxu1 %v177_v8 }
  0x12   : > { %472 = vmatpush3.bf16.msra.mxu0 %v177_v8  ;;  %485 = vmatpush3.bf16.msra.mxu1 %v177_v8 }
  0x13   : > { %473 = vmatprep.subr.bf16.mxu0 %v176_v10  ;;  %484 = vmatprep.subr.bf16.mxu1 %v176_v10 }
  0x14   : > { %211 = vperm.xlu1 %497, %v189_v11   ;;  %201 = vperm.xlu0 %496, %v187_v12  }
  0x16   : > { %474 = vmatpush3.bf16.msra.mxu0 %v176_v10  ;;  %486 = vmatpush3.bf16.msra.mxu1 %v176_v10 }
  0x18   : > { %221 = vperm.xlu1 %497, %v191_v15   ;;  %216 = vperm.xlu0 %496, %v190_v16  }
  0x19   : > { %476 = vmatmul.mubr.msk.bf16.vlgmr.msra.gmra.mxu0 %vm254_vm0, %v500_v13  ;;  %480 = vmatmul.mubr.msk.bf16.vlgmr.msra.gmra.mxu1 %vm254_vm0, %v501_v14 }
  0x1c   : > { %231 = vperm.xlu1 %497, %v193_v17   ;;  %226 = vperm.xlu0 %496, %v192_v18  }
  0x89   : > { %v197_v19 = vpop.permute.xlu0 %196  ;;  %v207_v20 = vpop.permute.xlu1 %206 }
  0x8f   : > { %v202_v21 = vpop.permute.xlu0 %201  ;;  %v212_v22 = vpop.permute.xlu1 %211 }
  0x93   : > { %v217_v23 = vpop.permute.xlu0 %216  ;;  %v222_v24 = vpop.permute.xlu1 %221 }
  0x97   : > { %v227_v25 = vpop.permute.xlu0 %226  ;;  %v232_v32 = vpop.permute.xlu1 %231 }
  0xd9   : > { %v477_v26 = vpop.f32.mrf.mxu0  ;;  %v481_v27 = vpop.f32.mrf.mxu1 }
  0xda   : > { %v310_v28 = vadd.f32 %v477_v26, %v207_v20  ;;  %v326_v29 = vadd.f32 %v481_v27, %v227_v25 }
  0xdb   : > { %v301_v30 = vpop.f32.mrf.mxu0  ;;  %v317_v31 = vpop.f32.mrf.mxu1 }
  0xdc   : > { %v459_v33 = vpack.c.bf16 %v310_v28, %v310_v28  ;;  %v463_v34 = vpack.c.bf16 %v326_v29, %v326_v29  ;;  %v302_v35 = vadd.f32 %v301_v30, %v197_v19  ;;  %v318_v36 = vadd.f32 %v317_v31, %v217_v23 }
  0xdd   : > { %v478_v37 = vpop.f32.mrf.mxu0  ;;  %v482_v38 = vpop.f32.mrf.mxu1 }
  0xde   : > { %367 = vst.msk [vmem:[%s170_s20 + $0x8] sm:$0xf] %vm364_vm1, %v459_v33  ;;  %371 = vst.msk [vmem:[%s170_s20 + $0x18] sm:$0xf] %vm364_vm1, %v463_v34  ;;  %v457_v39 = vpack.c.bf16 %v302_v35, %v302_v35  ;;  %v461_v40 = vpack.c.bf16 %v318_v36, %v318_v36  ;;  %v313_v41 = vadd.f32 %v478_v37, %v212_v22 }
  0xdf   : > { %v329_v42 = vadd.f32 %v482_v38, %v232_v32  ;;  %v304_v43 = vpop.f32.mrf.mxu0  ;;  %v320_v44 = vpop.f32.mrf.mxu1 }
  0xe0   : > { %365 = vst.msk [vmem:[%s170_s20] sm:$0xf] %vm364_vm1, %v457_v39  ;;  %369 = vst.msk [vmem:[%s170_s20 + $0x10] sm:$0xf] %vm364_vm1, %v461_v40  ;;  %v460_v45 = vpack.c.bf16 %v313_v41, %v313_v41  ;;  %v305_v47 = vadd.f32 %v304_v43, %v202_v21  ;;  %v321_v48 = vadd.f32 %v320_v44, %v222_v24 }
  0xe1   : > { %v464_v46 = vpack.c.bf16 %v329_v42, %v329_v42 }
  0xe2   : > { %368 = vst.msk [vmem:[%s170_s20 + $0xc] sm:$0xf] %vm364_vm1, %v460_v45  ;;  %v458_v49 = vpack.c.bf16 %v305_v47, %v305_v47  ;;  %v462_v50 = vpack.c.bf16 %v321_v48, %v321_v48 }
  0xe3   : > { %372 = vst.msk [vmem:[%s170_s20 + $0x1c] sm:$0xf] %vm364_vm1, %v464_v46 }
  0xe4   : > { %366 = vst.msk [vmem:[%s170_s20 + $0x4] sm:$0xf] %vm364_vm1, %v458_v49  ;;  %370 = vst.msk [vmem:[%s170_s20 + $0x14] sm:$0xf] %vm364_vm1, %v462_v50 }
  0xe5 PF: > { %s13_s12 = sadd.s32 1, %s508_s12  }
  0xe6   : > { %p10_p4 = scmp.ge.s32.totalorder %s13_s12, 4  }
  0xe8   :  { %12 = sbr.rel (!%p10_p4) target bundleno = 1 (0x1), region = 62 }

// kernel: upsampling_forward.3
= control target key start
LH: loop header
LB: loop body
LE: loop exit
PB: predicated region body
PF: predicated region fallthrough
CT: control target
= control target key end

     0   :  { %s1918_s21 = smov 0   ;;  %s2292_s0 = inlined_call_operand.vmem [shape: bf16[2,16,256], index: 0, kind: input, shape index: {}]   ;;  %s2293_s1 = inlined_call_operand.vmem [shape: f32[2,16,256], index: 1, kind: input, shape index: {}]   ;;  %s2294_s2 = inlined_call_operand.vmem [shape: bf16[9,16,32], index: 2, kind: input, shape index: {}]   ;;  %s2295_s3 = inlined_call_operand.vmem [shape: f32[16,1], index: 3, kind: input, shape index: {}]   ;;  %s2296_s4 = inlined_call_operand.vmem [shape: bf16[9,16,16], index: 4, kind: input, shape index: {}]   ;;  %s2297_s5 = inlined_call_operand.vmem [shape: f32[16,1], index: 5, kind: input, shape index: {}]   ;;  %s2298_s6 = inlined_call_operand.vmem [shape: f32[2,16,256], index: 6, kind: output, shape index: {}]  }
   0x1 LB: > { %s1722_s22 = sadd.s32 4294967295, %s1875_s21   ;;  %p1726_p0 = scmp.ge.s32.totalorder %s1875_s21, 1  ;;  %s1875_s21 = sphi %s1918_s21, %s16_s21  }
   0x2   : > { %p222_p1 = scmp.lt.s32.totalorder %s1875_s21, 3 }
   0x4   : > { %p223_p2 = pnand %p1726_p0, %p222_p1 }
   0x5   : > { %p1926_p3 = scmp.lt.s32.totalorder (!%p223_p2), %s1722_s22, 1  ;;  %s1878_s8 = smov (!%p223_p2), 16  }
   0x6   : > { %226 = sbr.rel (%p223_p2) target bundleno = 1237 (0x4d5), region = 44  ;;  %s1879_s9 = smov (!%p223_p2), 112  }
   0x7   : > { %s1880_s10 = smov (!%p223_p2), 96   ;;  %s1881_s15 = smov (!%p223_p2), 1  }
   0x8   : > { %s1882_s16 = smov (!%p223_p2), 127  }
   0xb   : > { %vm273_vm0 = vcmask 125952   ;;  %vm278_vm1 = vcmask 257152   ;;  %v1877_v0 = vmov 0   ;;  %s2311_s22 = smov (!%p1926_p3, %s1722_s22), 1  ;;  %vm304_vm2 = vcmask 1043584   ;;  %v1847_v28 = vld [vmem:[%s2294_s2 + $0x8] sm:$0xff]  }
   0xc   : > { %274 = vst.msk [vmem:[#allocation2] sm:$0xf] %vm273_vm0, %v1877_v0  ;;  %275 = vst.msk [vmem:[#allocation2 + $0xc] sm:$0xf] %vm273_vm0, %v1877_v0  ;;  %458 = vmatprep.mubr.bf16.mxu0 %v1877_v0  ;;  %547 = vmatprep.mubr.bf16.mxu1 %v1877_v0  ;;  %s1816_s24 = sshll.u32 %s2311_s22, 4  ;;  %s1817_s25 = sshll.u32 %s2311_s22, 5 }
   0xd   : > { %279 = vst.msk [vmem:[#allocation2 + $0x8] sm:$0xf] %vm278_vm1, %v1877_v0  ;;  %280 = vst.msk [vmem:[#allocation2 + $0x14] sm:$0xf] %vm278_vm1, %v1877_v0  ;;  %1838 = vset.pattern.permute.xlu1 %v1877_v0  ;;  %1837 = vset.pattern.permute.xlu0 %v1877_v0  ;;  %s261_s28 = scalar_lea.vmem %s2292_s0, %s1816_s24  ;;  %s266_s7 = scalar_lea.vmem %s2293_s1, %s1817_s25  ;;  %vm305_vm3 = vcmask 1047556   ;;  %vm297_vm4 = vcmask 130048  }
   0xe   : > { %276 = vst.msk [vmem:[#allocation2 + $0x18] sm:$0xf] %vm273_vm0, %v1877_v0  ;;  %277 = vst.msk [vmem:[#allocation2 + $0x24] sm:$0xf] %vm273_vm0, %v1877_v0  ;;  %v287_v1 = vld [vmem:[%s261_s28] sm:$0xff]  ;;  %v288_v2 = vld [vmem:[%s261_s28 + $0x8] sm:$0xff]  ;;  %s271_s19 = scalar_lea.vmem %s2298_s6, %s1817_s25 }
   0xf   : > { %281 = vst.msk [vmem:[#allocation2 + $0x20] sm:$0xf] %vm278_vm1, %v1877_v0  ;;  %282 = vst.msk [vmem:[#allocation2 + $0x2c] sm:$0xf] %vm278_vm1, %v1877_v0  ;;  %291 = vrot.lane.b32.xlu1 %v287_v1, %s1878_s8  ;;  %v311_v3 = vld [vmem:[%s266_s7] sm:$0xff]  ;;  %v312_v4 = vld [vmem:[%s266_s7 + $0x8] sm:$0xff] }
  0x10   : > { %283 = vst.msk [vmem:[#allocation3] sm:$0xf] %vm273_vm0, %v1877_v0  ;;  %284 = vst.msk [vmem:[#allocation3 + $0xc] sm:$0xf] %vm273_vm0, %v1877_v0  ;;  %v313_v5 = vld [vmem:[%s266_s7 + $0x10] sm:$0xff]  ;;  %v1819_v6 = vpack.c.bf16 %v312_v4, %v311_v3  ;;  %v314_v7 = vld [vmem:[%s266_s7 + $0x18] sm:$0xff] }
  0x11   : > { %285 = vst.msk [vmem:[#allocation3 + $0x8] sm:$0xf] %vm278_vm1, %v1877_v0  ;;  %286 = vst.msk [vmem:[#allocation3 + $0x14] sm:$0xf] %vm278_vm1, %v1877_v0  ;;  %v1820_v8 = vpack.c.bf16 %v314_v7, %v313_v5  ;;  %vm422_vm6 = vcmask 261120   ;;  %v381_v29 = vld [vmem:[%s2295_s3 + $0x8] sm:$0xff] }
  0x12   : > { %325 = vrot.lane.b32.xlu0 %v1819_v6, %s1878_s8  ;;  %vm1970_vm5 = vmor %vm305_vm3, %vm304_vm2  ;;  %v380_v30 = vld [vmem:[%s2295_s3] sm:$0xff]  ;;  %vm503_vm7 = vcmask 916480   ;;  %vm582_vm8 = vcmask 785408   ;;  %v1849_v52 = vld [vmem:[%s2294_s2 + $0x38] sm:$0xff]  }
  0x13   : > { %293 = vrot.lane.b32.xlu1 %v288_v2, %s1878_s8  ;;  %v1848_v47 = vld [vmem:[%s2294_s2 + $0x20] sm:$0xff]   ;;  %v1850_v53 = vld [vmem:[%s2294_s2 + $0x18] sm:$0xff]   ;;  %v1852_v55 = vld [vmem:[%s2294_s2 + $0x30] sm:$0xff]  }
  0x14   : > { %v1851_v54 = vld [vmem:[%s2294_s2] sm:$0xff]   ;;  %v1853_v56 = vld [vmem:[%s2294_s2 + $0x28] sm:$0xff]   ;;  %v1854_v57 = vld [vmem:[%s2294_s2 + $0x10] sm:$0xff]  }
  0x15   : > { %v1855_v58 = vld [vmem:[%s2294_s2 + $0x40] sm:$0xff]   ;;  %v1053_v10 = vld [vmem:[%s2297_s5 + $0x8] sm:$0xff] }
  0x16   : > { %327 = vrot.lane.b32.xlu0 %v1820_v8, %s1878_s8 }
  0x81   : > { %v292_v9 = vpop.permute.xlu1 %291 }
  0x82   : > { %v295_v11 = vrot.slane %v292_v9, 4 }
  0x84   : > { %v298_v12 = vsel %vm297_vm4, %v295_v11, %v292_v9  ;;  %308 = vst.msk [vmem:[#allocation2 + $0x8] sm:$0xf] %vm273_vm0, %v295_v11  ;;  %v326_v13 = vpop.permute.xlu0 %325 }
  0x85   : > { %307 = vst.msk [vmem:[#allocation2] sm:$0xff] %vm1970_vm5, %v298_v12  ;;  %v329_v14 = vrot.slane %v326_v13, 4  ;;  %v294_v15 = vpop.permute.xlu1 %293 }
  0x86   : > { %v296_v16 = vrot.slane %v294_v15, 4 }
  0x87   : > { %v331_v17 = vsel %vm297_vm4, %v329_v14, %v326_v13  ;;  %338 = vst.msk [vmem:[#allocation2 + $0x20] sm:$0xf] %vm273_vm0, %v329_v14 }
  0x88   : > { %337 = vst.msk [vmem:[#allocation2 + $0x18] sm:$0xff] %vm1970_vm5, %v331_v17  ;;  %v299_v18 = vsel %vm297_vm4, %v296_v16, %v294_v15  ;;  %v328_v19 = vpop.permute.xlu0 %327 }
  0x89   : > { %310 = vst.msk [vmem:[#allocation2 + $0x14] sm:$0xf] %vm273_vm0, %v296_v16  ;;  %v330_v20 = vrot.slane %v328_v19, 4 }
  0x8a   : > { %309 = vst.msk [vmem:[#allocation2 + $0xc] sm:$0xff] %vm1970_vm5, %v299_v18 }
  0x8b   : > { %v332_v21 = vsel %vm297_vm4, %v330_v20, %v328_v19  ;;  %340 = vst.msk [vmem:[#allocation2 + $0x2c] sm:$0xf] %vm273_vm0, %v330_v20 }
  0x8c   : > { %339 = vst.msk [vmem:[#allocation2 + $0x24] sm:$0xff] %vm1970_vm5, %v332_v21 }
  0x90   : > { %v1839_v22 = vld [vmem:[#allocation2 + $0x8] ss:$12 sps:$4 sm:$0xff]  }
  0x91   : > { %v1990_v23 = vld [vmem:[#allocation2 + $0x4] ss:$12 sps:$4 sm:$0xff]   ;;  %495 = vrot.lane.b32.xlu1 %v1839_v22, %s1879_s9  ;;  %v2004_v27 = vld [vmem:[#allocation2] ss:$12 sps:$4 sm:$0xff]  }
  0x92   : > { %493 = vrot.lane.b32.xlu0 %v1990_v23, %s1879_s9  ;;  %v1845_v24 = vld [vmem:[#allocation2 + $0x20] ss:$12 sps:$4 sm:$0xff]  }
  0x93   : > { %v1995_v25 = vld [vmem:[#allocation2 + $0x1c] ss:$12 sps:$4 sm:$0xff]   ;;  %v1997_v26 = vld [vmem:[#allocation2 + $0x18] ss:$12 sps:$4 sm:$0xff]  }
  0x94   : > { %438 = vmatprep.subr.bf16.mxu0 %v1995_v25 }
  0x95   : > { %501 = vrot.lane.b32.xlu1 %v1845_v24, %s1879_s9  ;;  %439 = vmatpush1.bf16.msra.mxu0 %v1997_v26 }
  0x96   : > { %580 = vrot.lane.b32.xlu0 %v1845_v24, %s1880_s10  ;;  %440 = vmatprep.subr.bf16.mxu0 %v1990_v23 }
  0x99   : > { %572 = vrot.lane.b32.xlu1 %v1990_v23, %s1880_s10  ;;  %441 = vmatpush1.bf16.msra.mxu0 %v2004_v27 }
  0x9a   : > { %499 = vrot.lane.b32.xlu0 %v1995_v25, %s1879_s9 }
  0x9c   : > { %1742 = vmatmul.mubr.msk.bf16.vlgmr.msra.gmra.mxu0 %vm422_vm6, %v1847_v28 }
  0x9d   : > { %578 = vrot.lane.b32.xlu1 %v1995_v25, %s1880_s10  ;;  %626 = vmatprep.mubr.bf16.mxu0 %v1877_v0 }
  0x9e   : > { %497 = vrot.lane.b32.xlu0 %v1997_v26, %s1879_s9 }
  0xa1   : > { %576 = vrot.lane.b32.xlu1 %v1997_v26, %s1880_s10 }
  0xa2   : > { %491 = vrot.lane.b32.xlu0 %v2004_v27, %s1879_s9 }
  0xa5   : > { %570 = vrot.lane.b32.xlu1 %v2004_v27, %s1880_s10 }
  0xa6   : > { %574 = vrot.lane.b32.xlu0 %v1839_v22, %s1880_s10 }
  0xa9   : > { %389 = vperm.xlu1 %1838, %v381_v29  }
  0xaa   : > { %384 = vperm.xlu0 %1837, %v380_v30  }
 0x103   : > { %v496_v31 = vpop.permute.xlu1 %495 }
 0x104   : > { %v494_v32 = vpop.permute.xlu0 %493 }
 0x105   : > { %v505_v42 = vsel %vm503_vm7, %v494_v32, %v496_v31 }
 0x107   : > { %v502_v33 = vpop.permute.xlu1 %501 }
 0x108   : > { %v581_v34 = vpop.permute.xlu0 %580 }
 0x10b   : > { %v573_v35 = vpop.permute.xlu1 %572 }
 0x10c   : > { %v500_v36 = vpop.permute.xlu0 %499 }
 0x10d   : > { %v507_v37 = vsel %vm503_vm7, %v500_v36, %v502_v33 }
 0x10e   : > { %527 = vmatprep.subr.bf16.mxu1 %v507_v37 }
 0x10f   : > { %v579_v38 = vpop.permute.xlu1 %578 }
 0x110   : > { %v498_v39 = vpop.permute.xlu0 %497  ;;  %v586_v40 = vsel %vm582_vm8, %v579_v38, %v581_v34 }
 0x111   : > { %606 = vmatprep.subr.bf16.mxu0 %v586_v40  ;;  %v506_v41 = vsel %vm503_vm7, %v498_v39, %v500_v36 }
 0x112   : > { %528 = vmatpush1.bf16.msra.mxu1 %v506_v41 }
 0x113   : > { %v577_v43 = vpop.permute.xlu1 %576  ;;  %529 = vmatprep.subr.bf16.mxu1 %v505_v42 }
 0x114   : > { %v585_v44 = vsel %vm582_vm8, %v577_v43, %v579_v38  ;;  %v492_v45 = vpop.permute.xlu0 %491 }
 0x115   : > { %607 = vmatpush1.bf16.msra.mxu0 %v585_v44  ;;  %v504_v46 = vsel %vm503_vm7, %v492_v45, %v494_v32 }
 0x116   : > { %530 = vmatpush1.bf16.msra.mxu1 %v504_v46 }
 0x117   : > { %v571_v48 = vpop.permute.xlu1 %570  ;;  %666 = vmatprep.subr.bf16.mxu1 %v507_v37 }
 0x118   : > { %v575_v49 = vpop.permute.xlu0 %574  ;;  %v583_v51 = vsel %vm582_vm8, %v571_v48, %v573_v35 }
 0x119   : > { %1748 = vmatmul.mubr.msk.bf16.vlgmr.msra.gmra.mxu1 %vm422_vm6, %v1848_v47  ;;  %v584_v50 = vsel %vm582_vm8, %v573_v35, %v575_v49 }
 0x11a   : > { %608 = vmatprep.subr.bf16.mxu0 %v584_v50  ;;  %667 = vmatpush1.bf16.msra.mxu1 %v506_v41 }
 0x11b   : > { %609 = vmatpush1.bf16.msra.mxu0 %v583_v51  ;;  %668 = vmatprep.subr.bf16.mxu1 %v505_v42 }
 0x11c   : > { %717 = vmatprep.subr.bf16.mxu0 %v1995_v25  ;;  %686 = vmatprep.mubr.bf16.mxu1 %v1877_v0 }
 0x11e   : > { %1752 = vmatmul.mubr.msk.bf16.vlgmr.msra.gmra.mxu0 %vm422_vm6, %v1849_v52  ;;  %669 = vmatpush1.bf16.msra.mxu1 %v504_v46 }
 0x11f   : > { %718 = vmatpush1.bf16.msra.mxu0 %v1997_v26  ;;  %771 = vmatprep.subr.bf16.mxu1 %v586_v40 }
 0x120   : > { %719 = vmatprep.subr.bf16.mxu0 %v1990_v23  ;;  %737 = vmatprep.mubr.bf16.mxu0 %v1877_v0 }
 0x121   : > { %1756 = vmatmul.mubr.msk.bf16.vlgmr.msra.gmra.mxu1 %vm422_vm6, %v1850_v53 }
 0x122   : > { %772 = vmatpush1.bf16.msra.mxu1 %v585_v44  ;;  %791 = vmatprep.mubr.bf16.mxu1 %v1877_v0 }
 0x123   : > { %720 = vmatpush1.bf16.msra.mxu0 %v2004_v27  ;;  %773 = vmatprep.subr.bf16.mxu1 %v584_v50 }
 0x124   : > { %857 = vmatprep.subr.bf16.mxu0 %v507_v37  ;;  %v390_v1 = vpop.permute.xlu1 %389 }
 0x125   : > { %v385_v60 = vpop.permute.xlu0 %384 }
 0x126   : > { %1758 = vmatmul.mubr.msk.bf16.vlgmr.msra.gmra.mxu0 %vm422_vm6, %v1851_v54  ;;  %774 = vmatpush1.bf16.msra.mxu1 %v583_v51 }
 0x127   : > { %858 = vmatpush1.bf16.msra.mxu0 %v506_v41  ;;  %908 = vmatprep.subr.bf16.mxu1 %v1995_v25 }
 0x128   : > { %859 = vmatprep.subr.bf16.mxu0 %v505_v42  ;;  %877 = vmatprep.mubr.bf16.mxu0 %v1877_v0 }
 0x129   : > { %1762 = vmatmul.mubr.msk.bf16.vlgmr.msra.gmra.mxu1 %vm422_vm6, %v1852_v55 }
 0x12a   : > { %909 = vmatpush1.bf16.msra.mxu1 %v1997_v26  ;;  %928 = vmatprep.mubr.bf16.mxu1 %v1877_v0 }
 0x12b   : > { %860 = vmatpush1.bf16.msra.mxu0 %v504_v46  ;;  %910 = vmatprep.subr.bf16.mxu1 %v1990_v23 }
 0x12c   : > { %962 = vmatprep.subr.bf16.mxu0 %v586_v40 }
 0x12e   : > { %1768 = vmatmul.mubr.msk.bf16.vlgmr.msra.gmra.mxu0 %vm422_vm6, %v1853_v56  ;;  %911 = vmatpush1.bf16.msra.mxu1 %v2004_v27 }
 0x12f   : > { %963 = vmatpush1.bf16.msra.mxu0 %v585_v44  ;;  %982 = vmatprep.mubr.bf16.mxu0 %v1877_v0 }
 0x130   : > { %964 = vmatprep.subr.bf16.mxu0 %v584_v50 }
 0x131   : > { %1770 = vmatmul.mubr.msk.bf16.vlgmr.msra.gmra.mxu1 %vm422_vm6, %v1854_v57 }
 0x132   : > { %1120 = vmatprep.mubr.bf16.mxu1 %v1877_v0 }
 0x133   : > { %965 = vmatpush1.bf16.msra.mxu0 %v583_v51 }
 0x136   : > { %1774 = vmatmul.mubr.msk.bf16.vlgmr.msra.gmra.mxu0 %vm422_vm6, %v1855_v58 }
 0x137   : > { %1193 = vmatprep.mubr.bf16.mxu0 %v1877_v0 }
 0x15c   : > { %v460_v59 = vpop.f32.mrf.mxu0 }
 0x15d   : > { %v469_v62 = vadd.f32 %v460_v59, %v385_v60 }
 0x15e   : > { %v462_v61 = vpop.f32.mrf.mxu0 }
 0x15f   : > { %v470_v3 = vadd.f32 %v462_v61, %v385_v60 }
 0x160   : > { %v464_v63 = vpop.f32.mrf.mxu0 }
 0x161   : > { %v471_v6 = vadd.f32 %v464_v63, %v390_v1  ;;  %v341_v63 = vlaneseq }
 0x162   : > { %v466_v7 = vpop.f32.mrf.mxu0 }
 0x163   : > { %v472_v16 = vadd.f32 %v466_v7, %v390_v1  ;;  %v2105_v1 = vand.u32 127, %v341_v63 }
 0x165   : > { %vm814_vm9 = vcmp.lt.s32.totalorder %v2105_v1, 1  ;;  %vm1005_vm12 = vcmp.lt.s32.totalorder %v2105_v1, 127 }
 0x1d9   : > { %v549_v2 = vpop.f32.mrf.mxu1 }
 0x1da   : > { %v558_v4 = vadd.f32 %v549_v2, %v469_v62 }
 0x1db   : > { %v551_v5 = vpop.f32.mrf.mxu1 }
 0x1dc   : > { %v559_v8 = vadd.f32 %v551_v5, %v470_v3  ;;  %v343_v3 = vadd.s32 128, %v2105_v1  ;;  %v348_v5 = vand.u32 15, %v2105_v1 }
 0x1dd   : > { %v553_v9 = vpop.f32.mrf.mxu1 }
 0x1de   : > { %v560_v11 = vadd.f32 %v553_v9, %v471_v6  ;;  %v628_v12 = vpop.f32.mrf.mxu0  ;;  %v355_v6 = vand.u32 15, %v343_v3  ;;  %vm2110_vm10 = vcmp.gt.s32.totalorder %v348_v5, 0  ;;  %vm2131_vm13 = vcmp.lt.s32.totalorder %v348_v5, 15  ;;  %v1863_v5 = vld [vmem:[%s2296_s4 + $0x18] sm:$0xff]  }
 0x1df   : > { %v2089_v13 = vadd.f32 %v628_v12, %v558_v4  ;;  %v555_v14 = vpop.f32.mrf.mxu1 }
 0x1e0   : > { %v630_v15 = vpop.f32.mrf.mxu0  ;;  %v561_v20 = vadd.f32 %v555_v14, %v472_v16  ;;  %vm2116_vm11 = vcmp.gt.s32.totalorder %v355_v6, 0  ;;  %vm2135_vm14 = vcmp.lt.s32.totalorder %v355_v6, 15  ;;  %v1864_v6 = vld [vmem:[%s2296_s4] sm:$0xff]  }
 0x1e1   : > { %v2091_v17 = vadd.f32 %v630_v15, %v559_v8  ;;  %v688_v18 = vpop.f32.mrf.mxu1 }
 0x1e2   : > { %v632_v19 = vpop.f32.mrf.mxu0 }
 0x1e3   : > { %v2093_v21 = vadd.f32 %v632_v19, %v560_v11  ;;  %v690_v22 = vpop.f32.mrf.mxu1 }
 0x1e4   : > { %v634_v23 = vpop.f32.mrf.mxu0 }
 0x1e5   : > { %v2095_v24 = vadd.f32 %v634_v23, %v561_v20  ;;  %v692_v25 = vpop.f32.mrf.mxu1 }
 0x1e6   : > { %v739_v26 = vpop.f32.mrf.mxu0 }
 0x1e7   : > { %v740_v27 = vadd.f32 %v739_v26, %v688_v18  ;;  %v694_v28 = vpop.f32.mrf.mxu1 }
 0x1e8   : > { %v741_v29 = vpop.f32.mrf.mxu0 }
 0x1e9   : > { %v793_v30 = vpop.f32.mrf.mxu1  ;;  %v742_v31 = vadd.f32 %v741_v29, %v690_v22 }
 0x1ea   : > { %v802_v32 = vadd.f32 %v793_v30, %v740_v27  ;;  %v743_v33 = vpop.f32.mrf.mxu0 }
 0x1eb   : > { %v744_v34 = vadd.f32 %v743_v33, %v692_v25  ;;  %v795_v35 = vpop.f32.mrf.mxu1 }
 0x1ec   : > { %v745_v36 = vpop.f32.mrf.mxu0  ;;  %806 = vrot.lane.b32.xlu1 %v802_v32, %s1881_s15  ;;  %v803_v38 = vadd.f32 %v795_v35, %v742_v31 }
 0x1ed   : > { %v797_v37 = vpop.f32.mrf.mxu1  ;;  %v746_v39 = vadd.f32 %v745_v36, %v694_v28 }
 0x1ee   : > { %v804_v40 = vadd.f32 %v797_v37, %v744_v34  ;;  %v879_v41 = vpop.f32.mrf.mxu0 }
 0x1ef   : > { %v799_v42 = vpop.f32.mrf.mxu1 }
 0x1f0   : > { %v881_v43 = vpop.f32.mrf.mxu0  ;;  %808 = vrot.lane.b32.xlu0 %v804_v40, %s1881_s15  ;;  %810 = vrot.lane.b32.xlu1 %v803_v38, %s1881_s15  ;;  %v805_v45 = vadd.f32 %v799_v42, %v746_v39 }
 0x1f1   : > { %v930_v44 = vpop.f32.mrf.mxu1 }
 0x1f2   : > { %v883_v46 = vpop.f32.mrf.mxu0  ;;  %v931_v49 = vadd.f32 %v930_v44, %v879_v41 }
 0x1f3   : > { %v932_v47 = vpop.f32.mrf.mxu1 }
 0x1f4   : > { %v885_v48 = vpop.f32.mrf.mxu0  ;;  %812 = vrot.lane.b32.xlu0 %v805_v45, %s1881_s15  ;;  %v933_v54 = vadd.f32 %v932_v47, %v881_v43 }
 0x1f5   : > { %v934_v50 = vpop.f32.mrf.mxu1 }
 0x1f6   : > { %v984_v51 = vpop.f32.mrf.mxu0  ;;  %v935_v55 = vadd.f32 %v934_v50, %v883_v46 }
 0x1f7   : > { %v993_v52 = vadd.f32 %v984_v51, %v931_v49  ;;  %v936_v56 = vpop.f32.mrf.mxu1 }
 0x1f8   : > { %v986_v53 = vpop.f32.mrf.mxu0  ;;  %v937_v61 = vadd.f32 %v936_v56, %v885_v48 }
 0x1f9   : > { %997 = vrot.lane.b32.xlu1 %v993_v52, %s1882_s16  ;;  %v994_v58 = vadd.f32 %v986_v53, %v933_v54  ;;  %v1860_v53 = vld [vmem:[%s2296_s4 + $0x8] sm:$0xff]   ;;  %v1052_v54 = vld [vmem:[%s2297_s5] sm:$0xff] }
 0x1fa   : > { %v988_v57 = vpop.f32.mrf.mxu0 }
 0x1fb   : > { %v995_v59 = vadd.f32 %v988_v57, %v935_v55 }
 0x1fc   : > { %v990_v60 = vpop.f32.mrf.mxu0 }
 0x1fd   : > { %999 = vrot.lane.b32.xlu0 %v995_v59, %s1882_s16  ;;  %1001 = vrot.lane.b32.xlu1 %v994_v58, %s1882_s16  ;;  %v996_v62 = vadd.f32 %v990_v60, %v937_v61  ;;  %v1861_v61 = vld [vmem:[%s2296_s4 + $0x20] sm:$0xff]  }
 0x201   : > { %1003 = vrot.lane.b32.xlu0 %v996_v62, %s1882_s16 }
 0x25e   : > { %v807_v2 = vpop.permute.xlu1 %806 }
 0x262   : > { %v809_v4 = vpop.permute.xlu0 %808  ;;  %v811_v7 = vpop.permute.xlu1 %810 }
 0x263   : > { %v817_v9 = vsel %vm814_vm9, %v811_v7, %v807_v2  ;;  %v815_v12 = vsel %vm814_vm9, %v807_v2, %v811_v7  ;;  %v1865_v7 = vld [vmem:[%s2296_s4 + $0x30] sm:$0xff]  }
 0x264   : > { %v823_v16 = vsel %vm2110_vm10, %v817_v9, 0.0  ;;  %v824_v18 = vsel %vm2116_vm11, %v815_v12, 0.0  ;;  %v1866_v9 = vld [vmem:[%s2296_s4 + $0x28] sm:$0xff]   ;;  %v1867_v12 = vld [vmem:[%s2296_s4 + $0x10] sm:$0xff]  }
 0x265   : > { %v827_v25 = vadd.f32 %v823_v16, %v2089_v13  ;;  %v828_v28 = vadd.f32 %v824_v18, %v2091_v17 }
 0x266   : > { %v813_v14 = vpop.permute.xlu0 %812 }
 0x267   : > { %v818_v19 = vsel %vm814_vm9, %v813_v14, %v809_v4  ;;  %v816_v20 = vsel %vm814_vm9, %v809_v4, %v813_v14  ;;  %v1862_v4 = vld [vmem:[%s2296_s4 + $0x38] sm:$0xff]   ;;  %v1868_v14 = vld [vmem:[%s2296_s4 + $0x40] sm:$0xff]  }
 0x268   : > { %v825_v29 = vsel %vm2110_vm10, %v818_v19, 0.0  ;;  %v826_v32 = vsel %vm2116_vm11, %v816_v20, 0.0 }
 0x269   : > { %v829_v35 = vadd.f32 %v825_v29, %v2093_v21  ;;  %v830_v37 = vadd.f32 %v826_v32, %v2095_v24 }
 0x26b   : > { %v998_v15 = vpop.permute.xlu1 %997 }
 0x26f   : > { %v1000_v26 = vpop.permute.xlu0 %999  ;;  %v1002_v27 = vpop.permute.xlu1 %1001 }
 0x270   : > { %v1006_v30 = vsel %vm1005_vm12, %v998_v15, %v1002_v27  ;;  %v1008_v31 = vsel %vm1005_vm12, %v1002_v27, %v998_v15 }
 0x271   : > { %v1014_v33 = vsel %vm2131_vm13, %v1006_v30, 0.0  ;;  %v1015_v13 = vsel %vm2135_vm14, %v1008_v31, 0.0 }
 0x272   : > { %v1018_v34 = vadd.f32 %v1014_v33, %v827_v25  ;;  %v1019_v17 = vadd.f32 %v1015_v13, %v828_v28 }
 0x273   : > { %v1004_v36 = vpop.permute.xlu0 %1003 }
 0x274   : > { %v1007_v38 = vsel %vm1005_vm12, %v1000_v26, %v1004_v36  ;;  %v1009_v39 = vsel %vm1005_vm12, %v1004_v36, %v1000_v26  ;;  %v1821_v40 = vpack.c.bf16 %v1019_v17, %v1018_v34 }
 0x275   : > { %v1016_v41 = vsel %vm2131_vm13, %v1007_v38, 0.0  ;;  %v1017_v42 = vsel %vm2135_vm14, %v1009_v39, 0.0 }
 0x276   : > { %v1020_v43 = vadd.f32 %v1016_v41, %v829_v35  ;;  %v1021_v44 = vadd.f32 %v1017_v42, %v830_v37  ;;  %1032 = vrot.lane.b32.xlu1 %v1821_v40, %s1878_s8 }
 0x278   : > { %v1822_v21 = vpack.c.bf16 %v1021_v44, %v1020_v43 }
 0x27a   : > { %1034 = vrot.lane.b32.xlu0 %v1822_v21, %s1878_s8 }
 0x2e8   : > { %v1033_v24 = vpop.permute.xlu1 %1032 }
 0x2e9   : > { %v1036_v45 = vrot.slane %v1033_v24, 4 }
 0x2eb   : > { %v1038_v46 = vsel %vm297_vm4, %v1036_v45, %v1033_v24  ;;  %1045 = vst.msk [vmem:[#allocation3 + $0x8] sm:$0xf] %vm273_vm0, %v1036_v45 }
 0x2ec   : > { %1044 = vst.msk [vmem:[#allocation3] sm:$0xff] %vm1970_vm5, %v1038_v46  ;;  %v1035_v47 = vpop.permute.xlu0 %1034 }
 0x2ed   : > { %v1037_v48 = vrot.slane %v1035_v47, 4 }
 0x2ef   : > { %v1039_v49 = vsel %vm297_vm4, %v1037_v48, %v1035_v47  ;;  %1047 = vst.msk [vmem:[#allocation3 + $0x14] sm:$0xf] %vm273_vm0, %v1037_v48 }
 0x2f0   : > { %1046 = vst.msk [vmem:[#allocation3 + $0xc] sm:$0xff] %vm1970_vm5, %v1039_v49 }
 0x2f6   : > { %v1856_v50 = vld [vmem:[#allocation3 + $0x8] ss:$12 sps:$4 sm:$0xff]  }
 0x2f7   : > { %v1857_v51 = vld [vmem:[#allocation3 + $0x4] ss:$12 sps:$4 sm:$0xff]   ;;  %v1859_v52 = vld [vmem:[#allocation3] ss:$12 sps:$4 sm:$0xff]   ;;  %1152 = vrot.lane.b32.xlu0 %v1856_v50, %s1879_s9 }
 0x2f8   : > { %1150 = vrot.lane.b32.xlu1 %v1857_v51, %s1879_s9  ;;  %1102 = vmatprep.subr.bf16.mxu1 %v1857_v51 }
 0x2f9   : > { %1103 = vmatpush1.bf16.msra.mxu1 %v1859_v52 }
 0x2fb   : > { %1218 = vrot.lane.b32.xlu0 %v1857_v51, %s1880_s10 }
 0x2fc   : > { %1148 = vrot.lane.b32.xlu1 %v1859_v52, %s1879_s9  ;;  %1782 = vmatmul.mubr.msk.bf16.vlgmr.msra.gmra.mxu1 %vm297_vm4, %v1860_v53 }
 0x2fd   : > { %1261 = vmatprep.mubr.bf16.mxu1 %v1877_v0 }
 0x2ff   : > { %1216 = vrot.lane.b32.xlu0 %v1859_v52, %s1880_s10 }
 0x300   : > { %1220 = vrot.lane.b32.xlu1 %v1856_v50, %s1880_s10 }
 0x303   : > { %1061 = vperm.xlu0 %1837, %v1053_v10  }
 0x304   : > { %1056 = vperm.xlu1 %1838, %v1052_v54  }
 0x369   : > { %v1153_v55 = vpop.permute.xlu0 %1152 }
 0x36a   : > { %v1151_v56 = vpop.permute.xlu1 %1150 }
 0x36b   : > { %v1155_v57 = vsel %vm503_vm7, %v1151_v56, %v1153_v55 }
 0x36c   : > { %1175 = vmatprep.subr.bf16.mxu0 %v1155_v57 }
 0x36d   : > { %v1219_v58 = vpop.permute.xlu0 %1218 }
 0x36e   : > { %v1149_v59 = vpop.permute.xlu1 %1148 }
 0x36f   : > { %v1154_v60 = vsel %vm503_vm7, %v1149_v59, %v1151_v56 }
 0x370   : > { %1176 = vmatpush1.bf16.msra.mxu0 %v1154_v60 }
 0x371   : > { %v1217_v62 = vpop.permute.xlu0 %1216  ;;  %1303 = vmatprep.subr.bf16.mxu0 %v1155_v57 }
 0x372   : > { %v1221_v63 = vpop.permute.xlu1 %1220  ;;  %v1222_v3 = vsel %vm582_vm8, %v1217_v62, %v1219_v58 }
 0x373   : > { %1787 = vmatmul.mubr.msk.bf16.vlgmr.msra.gmra.mxu0 %vm297_vm4, %v1861_v61  ;;  %v1223_v2 = vsel %vm582_vm8, %v1219_v58, %v1221_v63 }
 0x374   : > { %1243 = vmatprep.subr.bf16.mxu1 %v1223_v2  ;;  %1304 = vmatpush1.bf16.msra.mxu0 %v1154_v60 }
 0x375   : > { %1244 = vmatpush1.bf16.msra.mxu1 %v1222_v3  ;;  %1408 = vmatprep.subr.bf16.mxu0 %v1223_v2 }
 0x376   : > { %1354 = vmatprep.subr.bf16.mxu1 %v1857_v51  ;;  %1321 = vmatprep.mubr.bf16.mxu0 %v1877_v0 }
 0x378   : > { %1791 = vmatmul.mubr.msk.bf16.vlgmr.msra.gmra.mxu1 %vm297_vm4, %v1862_v4 }
 0x379   : > { %1355 = vmatpush1.bf16.msra.mxu1 %v1859_v52  ;;  %1372 = vmatprep.mubr.bf16.mxu1 %v1877_v0 }
 0x37a   : > { %1489 = vmatprep.subr.bf16.mxu1 %v1155_v57 }
 0x37b   : > { %1795 = vmatmul.mubr.msk.bf16.vlgmr.msra.gmra.mxu0 %vm297_vm4, %v1863_v5 }
 0x37c   : > { %1409 = vmatpush1.bf16.msra.mxu0 %v1222_v3  ;;  %1426 = vmatprep.mubr.bf16.mxu0 %v1877_v0 }
 0x37d   : > { %1540 = vmatprep.subr.bf16.mxu0 %v1857_v51 }
 0x37e   : > { %v1062_v28 = vpop.permute.xlu0 %1061 }
 0x37f   : > { %v1057_v18 = vpop.permute.xlu1 %1056 }
 0x380   : > { %1797 = vmatmul.mubr.msk.bf16.vlgmr.msra.gmra.mxu1 %vm297_vm4, %v1864_v6 }
 0x381   : > { %1490 = vmatpush1.bf16.msra.mxu1 %v1154_v60  ;;  %1507 = vmatprep.mubr.bf16.mxu1 %v1877_v0 }
 0x382   : > { %1594 = vmatprep.subr.bf16.mxu1 %v1223_v2 }
 0x383   : > { %1801 = vmatmul.mubr.msk.bf16.vlgmr.msra.gmra.mxu0 %vm297_vm4, %v1865_v7 }
 0x384   : > { %1541 = vmatpush1.bf16.msra.mxu0 %v1859_v52  ;;  %1558 = vmatprep.mubr.bf16.mxu0 %v1877_v0 }
 0x388   : > { %1807 = vmatmul.mubr.msk.bf16.vlgmr.msra.gmra.mxu1 %vm297_vm4, %v1866_v9 }
 0x389   : > { %1595 = vmatpush1.bf16.msra.mxu1 %v1222_v3  ;;  %1612 = vmatprep.mubr.bf16.mxu1 %v1877_v0 }
 0x38b   : > { %1809 = vmatmul.mubr.msk.bf16.vlgmr.msra.gmra.mxu0 %vm297_vm4, %v1867_v12 }
 0x390   : > { %1813 = vmatmul.mubr.msk.bf16.vlgmr.msra.gmra.mxu1 %vm297_vm4, %v1868_v14 }
 0x3bc   : > { %v1122_v15 = vpop.f32.mrf.mxu1 }
 0x3bd   : > { %v1131_v19 = vadd.f32 %v1122_v15, %v1057_v18 }
 0x3be   : > { %v1124_v16 = vpop.f32.mrf.mxu1 }
 0x3bf   : > { %v1132_v26 = vadd.f32 %v1124_v16, %v1057_v18 }
 0x3c0   : > { %v1126_v20 = vpop.f32.mrf.mxu1 }
 0x3c1   : > { %v1133_v30 = vadd.f32 %v1126_v20, %v1062_v28 }
 0x3c2   : > { %v1128_v0 = vpop.f32.mrf.mxu1 }
 0x3c3   : > { %v1134_v36 = vadd.f32 %v1128_v0, %v1062_v28 }
 0x433   : > { %v1195_v25 = vpop.f32.mrf.mxu0 }
 0x434   : > { %v1204_v27 = vadd.f32 %v1195_v25, %v1131_v19 }
 0x435   : > { %v1197_v29 = vpop.f32.mrf.mxu0 }
 0x436   : > { %v1205_v31 = vadd.f32 %v1197_v29, %v1132_v26 }
 0x437   : > { %v1199_v32 = vpop.f32.mrf.mxu0 }
 0x438   : > { %v1206_v33 = vadd.f32 %v1199_v32, %v1133_v30  ;;  %v1263_v13 = vpop.f32.mrf.mxu1 }
 0x439   : > { %v2232_v34 = vadd.f32 %v1263_v13, %v1204_v27  ;;  %v1201_v17 = vpop.f32.mrf.mxu0 }
 0x43a   : > { %v1265_v35 = vpop.f32.mrf.mxu1  ;;  %v1207_v40 = vadd.f32 %v1201_v17, %v1134_v36 }
 0x43b   : > { %v2234_v37 = vadd.f32 %v1265_v35, %v1205_v31  ;;  %v1323_v38 = vpop.f32.mrf.mxu0 }
 0x43c   : > { %v1267_v39 = vpop.f32.mrf.mxu1 }
 0x43d   : > { %v2236_v41 = vadd.f32 %v1267_v39, %v1206_v33  ;;  %v1325_v42 = vpop.f32.mrf.mxu0 }
 0x43e   : > { %v1269_v43 = vpop.f32.mrf.mxu1 }
 0x43f   : > { %v2238_v44 = vadd.f32 %v1269_v43, %v1207_v40  ;;  %v1327_v21 = vpop.f32.mrf.mxu0 }
 0x440   : > { %v1374_v24 = vpop.f32.mrf.mxu1 }
 0x441   : > { %v1375_v45 = vadd.f32 %v1374_v24, %v1323_v38  ;;  %v1329_v46 = vpop.f32.mrf.mxu0 }
 0x442   : > { %v1376_v47 = vpop.f32.mrf.mxu1 }
 0x443   : > { %v1428_v48 = vpop.f32.mrf.mxu0  ;;  %v1377_v49 = vadd.f32 %v1376_v47, %v1325_v42 }
 0x444   : > { %v1437_v50 = vadd.f32 %v1428_v48, %v1375_v45  ;;  %v1378_v51 = vpop.f32.mrf.mxu1 }
 0x445   : > { %v1379_v52 = vadd.f32 %v1378_v51, %v1327_v21  ;;  %v1430_v53 = vpop.f32.mrf.mxu0 }
 0x446   : > { %v1380_v10 = vpop.f32.mrf.mxu1  ;;  %1441 = vrot.lane.b32.xlu1 %v1437_v50, %s1881_s15  ;;  %v1438_v55 = vadd.f32 %v1430_v53, %v1377_v49 }
 0x447   : > { %v1432_v54 = vpop.f32.mrf.mxu0  ;;  %v1381_v56 = vadd.f32 %v1380_v10, %v1329_v46 }
 0x448   : > { %v1439_v57 = vadd.f32 %v1432_v54, %v1379_v52  ;;  %v1509_v58 = vpop.f32.mrf.mxu1 }
 0x449   : > { %v1434_v59 = vpop.f32.mrf.mxu0 }
 0x44a   : > { %v1511_v60 = vpop.f32.mrf.mxu1  ;;  %1443 = vrot.lane.b32.xlu0 %v1439_v57, %s1881_s15  ;;  %1445 = vrot.lane.b32.xlu1 %v1438_v55, %s1881_s15  ;;  %v1440_v62 = vadd.f32 %v1434_v59, %v1381_v56 }
 0x44b   : > { %v1560_v61 = vpop.f32.mrf.mxu0 }
 0x44c   : > { %v1513_v63 = vpop.f32.mrf.mxu1  ;;  %v1561_v4 = vadd.f32 %v1560_v61, %v1509_v58 }
 0x44d   : > { %v1562_v2 = vpop.f32.mrf.mxu0 }
 0x44e   : > { %v1515_v3 = vpop.f32.mrf.mxu1  ;;  %1447 = vrot.lane.b32.xlu0 %v1440_v62, %s1881_s15  ;;  %v1563_v12 = vadd.f32 %v1562_v2, %v1511_v60 }
 0x44f   : > { %v1564_v5 = vpop.f32.mrf.mxu0 }
 0x450   : > { %v1614_v6 = vpop.f32.mrf.mxu1  ;;  %v1565_v14 = vadd.f32 %v1564_v5, %v1513_v63 }
 0x451   : > { %v1623_v7 = vadd.f32 %v1614_v6, %v1561_v4  ;;  %v1566_v15 = vpop.f32.mrf.mxu0 }
 0x452   : > { %v1616_v9 = vpop.f32.mrf.mxu1  ;;  %v1567_v25 = vadd.f32 %v1566_v15, %v1515_v3 }
 0x453   : > { %1627 = vrot.lane.b32.xlu1 %v1623_v7, %s1882_s16  ;;  %v1624_v18 = vadd.f32 %v1616_v9, %v1563_v12 }
 0x454   : > { %v1618_v16 = vpop.f32.mrf.mxu1 }
 0x455   : > { %v1625_v19 = vadd.f32 %v1618_v16, %v1565_v14 }
 0x456   : > { %v1620_v20 = vpop.f32.mrf.mxu1 }
 0x457   : > { %1629 = vrot.lane.b32.xlu0 %v1625_v19, %s1882_s16  ;;  %1631 = vrot.lane.b32.xlu1 %v1624_v18, %s1882_s16  ;;  %v1626_v26 = vadd.f32 %v1620_v20, %v1567_v25 }
 0x45b   : > { %1633 = vrot.lane.b32.xlu0 %v1626_v26, %s1882_s16 }
 0x4b8   : > { %v1442_v27 = vpop.permute.xlu1 %1441 }
 0x4bc   : > { %v1444_v28 = vpop.permute.xlu0 %1443  ;;  %v1446_v29 = vpop.permute.xlu1 %1445 }
 0x4bd   : > { %v1449_v30 = vsel %vm814_vm9, %v1442_v27, %v1446_v29  ;;  %v1451_v0 = vsel %vm814_vm9, %v1446_v29, %v1442_v27 }
 0x4be   : > { %v1453_v33 = vsel %vm2110_vm10, %v1451_v0, 0.0  ;;  %v1454_v13 = vsel %vm2116_vm11, %v1449_v30, 0.0 }
 0x4bf   : > { %v1457_v36 = vadd.f32 %v1453_v33, %v2232_v34  ;;  %v1458_v38 = vadd.f32 %v1454_v13, %v2234_v37 }
 0x4c0   : > { %v1448_v31 = vpop.permute.xlu0 %1447 }
 0x4c1   : > { %v1450_v17 = vsel %vm814_vm9, %v1444_v28, %v1448_v31  ;;  %v1452_v35 = vsel %vm814_vm9, %v1448_v31, %v1444_v28 }
 0x4c2   : > { %v1455_v42 = vsel %vm2110_vm10, %v1452_v35, 0.0  ;;  %v1456_v43 = vsel %vm2116_vm11, %v1450_v17, 0.0 }
 0x4c3   : > { %v1459_v8 = vadd.f32 %v1455_v42, %v2236_v41  ;;  %v1460_v11 = vadd.f32 %v1456_v43, %v2238_v44 }
 0x4c5   : > { %v1628_v32 = vpop.permute.xlu1 %1627 }
 0x4c9   : > { %v1630_v39 = vpop.permute.xlu0 %1629  ;;  %v1632_v40 = vpop.permute.xlu1 %1631 }
 0x4ca   : > { %v1635_v21 = vsel %vm1005_vm12, %v1628_v32, %v1632_v40  ;;  %v1637_v24 = vsel %vm1005_vm12, %v1632_v40, %v1628_v32 }
 0x4cb   : > { %v1639_v45 = vsel %vm2131_vm13, %v1635_v21, 0.0  ;;  %v1640_v34 = vsel %vm2135_vm14, %v1637_v24, 0.0 }
 0x4cc   : > { %v1643_v37 = vadd.f32 %v1639_v45, %v1457_v36  ;;  %v1644_v46 = vadd.f32 %v1640_v34, %v1458_v38 }
 0x4cd   : > { %v1634_v47 = vpop.permute.xlu0 %1633 }
 0x4ce   : > { %v1647_v48 = vmax.f32 %v1643_v37, 0.0  ;;  %v1648_v49 = vmax.f32 %v1644_v46, 0.0  ;;  %v1636_v50 = vsel %vm1005_vm12, %v1630_v39, %v1634_v47  ;;  %v1638_v51 = vsel %vm1005_vm12, %v1634_v47, %v1630_v39 }
 0x4cf   : > { %v1641_v52 = vsel %vm2131_vm13, %v1636_v50, 0.0  ;;  %v1642_v53 = vsel %vm2135_vm14, %v1638_v51, 0.0 }
 0x4d0   : > { %1651 = vst [vmem:[%s271_s19] sm:$0xff] %v1647_v48  ;;  %1652 = vst [vmem:[%s271_s19 + $0x8] sm:$0xff] %v1648_v49  ;;  %v1645_v41 = vadd.f32 %v1641_v52, %v1459_v8  ;;  %v1646_v10 = vadd.f32 %v1642_v53, %v1460_v11 }
 0x4d2   : > { %v1649_v44 = vmax.f32 %v1645_v41, 0.0  ;;  %v1650_v54 = vmax.f32 %v1646_v10, 0.0 }
 0x4d4   : > { %1653 = vst [vmem:[%s271_s19 + $0x10] sm:$0xff] %v1649_v44  ;;  %1654 = vst [vmem:[%s271_s19 + $0x18] sm:$0xff] %v1650_v54 }
 0x4d5 PF: > { %s16_s21 = sadd.s32 1, %s1875_s21  }
 0x4d6   : > { %p13_p4 = scmp.ge.s32.totalorder %s16_s21, 4  }
 0x4d8   :  { %15 = sbr.rel (!%p13_p4) target bundleno = 1 (0x1), region = 93 }

</bundles_post_ra>
